<compile_context>
chip_gen: v7x
topology: tpu7x:2x2x1
jax: 0.10.0
libtpu: 0.0.40
codegen_flags: <defaults>
</compile_context>

<pallas_src>
import math

import jax
import jax.numpy as jnp
from jax.experimental import pallas as pl
from jax.experimental.pallas import tpu as pltpu


def _round_up(x, m):
    return ((x + m - 1) // m) * m


def _make_dqn_kernel(n_layers):
    """Build a fused-MLP kernel for a fixed (static) number of layers."""

    def kernel(*refs):
        x_ref = refs[0]
        o_ref = refs[-1]
        param_refs = refs[1:-1]                 # (w0, b0, w1, b1, ...)
        compute_dtype = param_refs[0].dtype     # bf16 (or f32 on request)

        h = x_ref[...]                          # (bt, ds_p) in compute_dtype
        for i in range(n_layers):
            w_ref = param_refs[2 * i]
            b_ref = param_refs[2 * i + 1]
            # MXU matmul in compute_dtype, f32 accumulation; bias add in f32 on the VPU.
            h = jnp.dot(h.astype(compute_dtype), w_ref[...],
                        preferred_element_type=jnp.float32) + b_ref[...]
            if i < n_layers - 1:
                h = jnp.maximum(h, 0.0)         # ReLU in f32
        o_ref[...] = h.astype(o_ref.dtype)      # f32 Q-values

    return kernel


def dqn_net_forward(x, params, *, batch_tile=256, compute_dtype=jnp.bfloat16):
    """Fused DQNNet MLP forward.

    x: (B, dim_state) array. params: list of (W, b) with W (fan_in, fan_out), b (1, fan_out).
    Returns float32 (B, dim_act) Q-values.
    """
    n_layers = len(params)
    B, dim_state = x.shape
    dim_act = params[-1][0].shape[1]

    LANE = 128
    # Feature dims of every layer boundary, padded to 128 lanes (lane-dense I/O and stores).
    dims = [dim_state] + [w.shape[1] for w, _ in params]
    dims_p = [_round_up(d, LANE) for d in dims]
    ds_p, da_p = dims_p[0], dims_p[-1]

    # --- one-time host-side padding + cast of the parameters -------------------------------
    padded_params = []
    for i, (w, b) in enumerate(params):
        fi, fo = w.shape
        fi_p, fo_p = dims_p[i], dims_p[i + 1]
        w_p = jnp.zeros((fi_p, fo_p), compute_dtype).at[:fi, :fo].set(w.astype(compute_dtype))
        b_p = jnp.zeros((1, fo_p), jnp.float32).at[:, :fo].set(
            b.astype(jnp.float32).reshape(1, -1))
        padded_params.append((w_p, b_p))

    # --- batch tiling -----------------------------------------------------------------------
    # Large tile keeps the MXU busy; shrink to the (8-rounded) batch for tiny batches so a
    # small batch is a single grid step instead of being padded up to 256 rows.
    bt = max(8, min(batch_tile, _round_up(B, 8)))
    bt = _round_up(bt, 8)
    B_p = _round_up(B, bt)
    x_p = jnp.zeros((B_p, ds_p), compute_dtype).at[:B, :dim_state].set(x.astype(compute_dtype))

    grid = (B_p // bt,)

    # x / out tiled over batch; weights & biases are whole-array blocks whose index_map
    # returns a constant block index -> Pallas keeps them resident (no per-step re-DMA).
    x_spec = pl.BlockSpec((bt, ds_p), lambda i: (i, 0))
    o_spec = pl.BlockSpec((bt, da_p), lambda i: (i, 0))

    def full_spec(a):
        return pl.BlockSpec(a.shape, lambda i: (0,) * a.ndim)

    flat_params = []
    flat_specs = []
    for w_p, b_p in padded_params:
        flat_params += [w_p, b_p]
        flat_specs += [full_spec(w_p), full_spec(b_p)]

    # --- explicit VMEM budget ---------------------------------------------------------------
    param_bytes = sum(int(a.size) * a.dtype.itemsize for a in flat_params)
    io_bytes = 2 * (bt * ds_p * jnp.dtype(compute_dtype).itemsize + bt * da_p * 4)  # dbl-buffered
    act_bytes = 3 * bt * max(dims_p) * 4                                            # f32 slabs
    vmem_limit = int(min(max(2 * (param_bytes + io_bytes + act_bytes), 32 << 20), 64 << 20))

    out_p = pl.pallas_call(
        _make_dqn_kernel(n_layers),
        out_shape=jax.ShapeDtypeStruct((B_p, da_p), jnp.float32),
        grid=grid,
        in_specs=[x_spec] + flat_specs,
        out_specs=o_spec,
        compiler_params=pltpu.CompilerParams(
            dimension_semantics=("parallel",),   # >=2 steps -> both TCs on v7x
            vmem_limit_bytes=vmem_limit),
    )(x_p, *flat_params)

    # Strip batch / lane padding; keep Q-values in f32.
    return out_p[:B, :dim_act]


def init_dqn_params(key, dim_state, dim_act, depth=3, width=256, dtype=jnp.float32):
    """PyTorch-Linear-style init: U(-1/sqrt(fan_in), 1/sqrt(fan_in))."""
    dims = [dim_state] + [width] * depth + [dim_act]
    params = []
    for i in range(len(dims) - 1):
        fan_in, fan_out = dims[i], dims[i + 1]
        key, kw, kb = jax.random.split(key, 3)
        bound = 1.0 / (fan_in ** 0.5)
        w = jax.random.uniform(kw, (fan_in, fan_out), dtype, -bound, bound)
        b = jax.random.uniform(kb, (1, fan_out), dtype, -bound, bound)
        params.append((w, b))
    return params


def dqn_net_reference(x, params, compute_dtype=jnp.bfloat16):
    """Pure-JAX reference with the same bf16-matmul / f32-accumulate numerics as the kernel."""
    h = x
    n = len(params)
    for i, (w, b) in enumerate(params):
        h = jnp.dot(h.astype(compute_dtype), w.astype(compute_dtype),
                    preferred_element_type=jnp.float32) + b.astype(jnp.float32)
        if i < n - 1:
            h = jnp.maximum(h, 0.0)
    return h


if __name__ == "__main__":
    # Module defaults: depth=3, width=256; x = concat(obs, act) features.
    dim_state = 16
    dim_act = 4
    depth = 3
    width = 256
    batch = 512          # 2 grid steps at batch_tile=256 (exercises the parallel grid axis)

    key = jax.random.PRNGKey(0)
    key, kx = jax.random.split(key)
    x = jax.random.normal(kx, (batch, dim_state), dtype=jnp.float32)

    params = init_dqn_params(key, dim_state, dim_act, depth=depth, width=width)

    out = dqn_net_forward(x, params, batch_tile=256, compute_dtype=jnp.bfloat16)
    out = jax.block_until_ready(out)

    ref = dqn_net_reference(x, params, compute_dtype=jnp.bfloat16)
    assert out.shape == (batch, dim_act)
    assert out.dtype == jnp.float32
    assert jnp.allclose(out, ref, atol=1e-2, rtol=1e-2), "mismatch vs reference"

    # Also check a small, oddly-sized batch (exercises batch padding / single grid step).
    x_small = jax.random.normal(jax.random.PRNGKey(1), (13, dim_state), dtype=jnp.float32)
    out_small = jax.block_until_ready(dqn_net_forward(x_small, params))
    ref_small = dqn_net_reference(x_small, params)
    assert jnp.allclose(out_small, ref_small, atol=1e-2, rtol=1e-2), "small-batch mismatch"

    print("KERNEL_OK")
</pallas_src>

<mosaic_0001>
module attributes {stable_mosaic.version = 11 : i64} {
  func.func @kernel(%arg0: i32, %arg1: memref<256x128xbf16, #tpu.memory_space<vmem>>, %arg2: memref<128x256xbf16, #tpu.memory_space<vmem>>, %arg3: memref<1x256xf32, #tpu.memory_space<vmem>>, %arg4: memref<256x256xbf16, #tpu.memory_space<vmem>>, %arg5: memref<1x256xf32, #tpu.memory_space<vmem>>, %arg6: memref<256x256xbf16, #tpu.memory_space<vmem>>, %arg7: memref<1x256xf32, #tpu.memory_space<vmem>>, %arg8: memref<256x128xbf16, #tpu.memory_space<vmem>>, %arg9: memref<1x128xf32, #tpu.memory_space<vmem>>, %arg10: memref<256x128xf32, #tpu.memory_space<vmem>>) attributes {dimension_semantics = [#tpu.dimension_semantics<parallel>], iteration_bounds = array<i64: 2>, scalar_prefetch = 0 : i64, scratch_operands = 0 : i64, tpu.core_type = #tpu.core_type<tc>, window_params = [{transform_indices = @transform_0, window_bounds = array<i64: 256, 128>}, {pipeline_mode = #tpu.pipeline_mode<synchronous>, transform_indices = @transform_1, window_bounds = array<i64: 128, 256>}, {pipeline_mode = #tpu.pipeline_mode<synchronous>, transform_indices = @transform_2, window_bounds = array<i64: 1, 256>}, {pipeline_mode = #tpu.pipeline_mode<synchronous>, transform_indices = @transform_3, window_bounds = array<i64: 256, 256>}, {pipeline_mode = #tpu.pipeline_mode<synchronous>, transform_indices = @transform_4, window_bounds = array<i64: 1, 256>}, {pipeline_mode = #tpu.pipeline_mode<synchronous>, transform_indices = @transform_5, window_bounds = array<i64: 256, 256>}, {pipeline_mode = #tpu.pipeline_mode<synchronous>, transform_indices = @transform_6, window_bounds = array<i64: 1, 256>}, {pipeline_mode = #tpu.pipeline_mode<synchronous>, transform_indices = @transform_7, window_bounds = array<i64: 256, 128>}, {pipeline_mode = #tpu.pipeline_mode<synchronous>, transform_indices = @transform_8, window_bounds = array<i64: 1, 128>}, {transform_indices = @transform_9, window_bounds = array<i64: 256, 128>}]} {
    %c0 = arith.constant 0 : index
    %c0_0 = arith.constant 0 : index
    %0 = vector.load %arg1[%c0, %c0_0] : memref<256x128xbf16, #tpu.memory_space<vmem>>, vector<256x128xbf16>
    %c0_1 = arith.constant 0 : index
    %c0_2 = arith.constant 0 : index
    %1 = vector.load %arg2[%c0_1, %c0_2] : memref<128x256xbf16, #tpu.memory_space<vmem>>, vector<128x256xbf16>
    %cst = arith.constant dense<0.000000e+00> : vector<256x256xf32>
    %2 = tpu.matmul %0, %1, %cst {dimension_numbers = #tpu.dot_dimension_numbers<[1], [0], [0], [1], [0, 0, 1, 1], [], []>} : vector<256x128xbf16>, vector<128x256xbf16>, vector<256x256xf32> -> vector<256x256xf32>
    %c0_3 = arith.constant 0 : index
    %c0_4 = arith.constant 0 : index
    %3 = vector.load %arg3[%c0_3, %c0_4] : memref<1x256xf32, #tpu.memory_space<vmem>>, vector<1x256xf32>
    %4 = vector.broadcast %3 : vector<1x256xf32> to vector<256x256xf32>
    %5 = arith.addf %2, %4 : vector<256x256xf32>
    %cst_5 = arith.constant 0.000000e+00 : f32
    %6 = vector.broadcast %cst_5 : f32 to vector<256x256xf32>
    %7 = arith.maximumf %5, %6 : vector<256x256xf32>
    %8 = arith.truncf %7 : vector<256x256xf32> to vector<256x256xbf16>
    %c0_6 = arith.constant 0 : index
    %c0_7 = arith.constant 0 : index
    %9 = vector.load %arg4[%c0_6, %c0_7] : memref<256x256xbf16, #tpu.memory_space<vmem>>, vector<256x256xbf16>
    %cst_8 = arith.constant dense<0.000000e+00> : vector<256x256xf32>
    %10 = tpu.matmul %8, %9, %cst_8 {dimension_numbers = #tpu.dot_dimension_numbers<[1], [0], [0], [1], [0, 0, 1, 1], [], []>} : vector<256x256xbf16>, vector<256x256xbf16>, vector<256x256xf32> -> vector<256x256xf32>
    %c0_9 = arith.constant 0 : index
    %c0_10 = arith.constant 0 : index
    %11 = vector.load %arg5[%c0_9, %c0_10] : memref<1x256xf32, #tpu.memory_space<vmem>>, vector<1x256xf32>
    %12 = vector.broadcast %11 : vector<1x256xf32> to vector<256x256xf32>
    %13 = arith.addf %10, %12 : vector<256x256xf32>
    %cst_11 = arith.constant 0.000000e+00 : f32
    %14 = vector.broadcast %cst_11 : f32 to vector<256x256xf32>
    %15 = arith.maximumf %13, %14 : vector<256x256xf32>
    %16 = arith.truncf %15 : vector<256x256xf32> to vector<256x256xbf16>
    %c0_12 = arith.constant 0 : index
    %c0_13 = arith.constant 0 : index
    %17 = vector.load %arg6[%c0_12, %c0_13] : memref<256x256xbf16, #tpu.memory_space<vmem>>, vector<256x256xbf16>
    %cst_14 = arith.constant dense<0.000000e+00> : vector<256x256xf32>
    %18 = tpu.matmul %16, %17, %cst_14 {dimension_numbers = #tpu.dot_dimension_numbers<[1], [0], [0], [1], [0, 0, 1, 1], [], []>} : vector<256x256xbf16>, vector<256x256xbf16>, vector<256x256xf32> -> vector<256x256xf32>
    %c0_15 = arith.constant 0 : index
    %c0_16 = arith.constant 0 : index
    %19 = vector.load %arg7[%c0_15, %c0_16] : memref<1x256xf32, #tpu.memory_space<vmem>>, vector<1x256xf32>
    %20 = vector.broadcast %19 : vector<1x256xf32> to vector<256x256xf32>
    %21 = arith.addf %18, %20 : vector<256x256xf32>
    %cst_17 = arith.constant 0.000000e+00 : f32
    %22 = vector.broadcast %cst_17 : f32 to vector<256x256xf32>
    %23 = arith.maximumf %21, %22 : vector<256x256xf32>
    %24 = arith.truncf %23 : vector<256x256xf32> to vector<256x256xbf16>
    %c0_18 = arith.constant 0 : index
    %c0_19 = arith.constant 0 : index
    %25 = vector.load %arg8[%c0_18, %c0_19] : memref<256x128xbf16, #tpu.memory_space<vmem>>, vector<256x128xbf16>
    %cst_20 = arith.constant dense<0.000000e+00> : vector<256x128xf32>
    %26 = tpu.matmul %24, %25, %cst_20 {dimension_numbers = #tpu.dot_dimension_numbers<[1], [0], [0], [1], [0, 0, 1, 1], [], []>} : vector<256x256xbf16>, vector<256x128xbf16>, vector<256x128xf32> -> vector<256x128xf32>
    %c0_21 = arith.constant 0 : index
    %c0_22 = arith.constant 0 : index
    %27 = vector.load %arg9[%c0_21, %c0_22] : memref<1x128xf32, #tpu.memory_space<vmem>>, vector<1x128xf32>
    %28 = vector.broadcast %27 : vector<1x128xf32> to vector<256x128xf32>
    %29 = arith.addf %26, %28 : vector<256x128xf32>
    %c0_23 = arith.constant 0 : index
    %c0_24 = arith.constant 0 : index
    %30 = vector.load %arg10[%c0_23, %c0_24] : memref<256x128xf32, #tpu.memory_space<vmem>>, vector<256x128xf32>
    tpu.vector_store %arg10[%c0_23, %c0_24], %29 {strides = array<i32>} : memref<256x128xf32, #tpu.memory_space<vmem>>, vector<256x128xf32>,
    return
  }
  func.func @transform_0(%arg0: i32) -> (i32, i32) {
    %c0_i32 = arith.constant 0 : i32
    %c0_i32_0 = arith.constant 0 : i32
    return %arg0, %c0_i32 : i32, i32
  }
  func.func @transform_1(%arg0: i32) -> (i32, i32) {
    %c0_i32 = arith.constant 0 : i32
    %c0_i32_0 = arith.constant 0 : i32
    %c0_i32_1 = arith.constant 0 : i32
    return %c0_i32, %c0_i32_0 : i32, i32
  }
  func.func @transform_2(%arg0: i32) -> (i32, i32) {
    %c0_i32 = arith.constant 0 : i32
    %c0_i32_0 = arith.constant 0 : i32
    %c0_i32_1 = arith.constant 0 : i32
    return %c0_i32, %c0_i32_0 : i32, i32
  }
  func.func @transform_3(%arg0: i32) -> (i32, i32) {
    %c0_i32 = arith.constant 0 : i32
    %c0_i32_0 = arith.constant 0 : i32
    %c0_i32_1 = arith.constant 0 : i32
    return %c0_i32, %c0_i32_0 : i32, i32
  }
  func.func @transform_4(%arg0: i32) -> (i32, i32) {
    %c0_i32 = arith.constant 0 : i32
    %c0_i32_0 = arith.constant 0 : i32
    %c0_i32_1 = arith.constant 0 : i32
    return %c0_i32, %c0_i32_0 : i32, i32
  }
  func.func @transform_5(%arg0: i32) -> (i32, i32) {
    %c0_i32 = arith.constant 0 : i32
    %c0_i32_0 = arith.constant 0 : i32
    %c0_i32_1 = arith.constant 0 : i32
    return %c0_i32, %c0_i32_0 : i32, i32
  }
  func.func @transform_6(%arg0: i32) -> (i32, i32) {
    %c0_i32 = arith.constant 0 : i32
    %c0_i32_0 = arith.constant 0 : i32
    %c0_i32_1 = arith.constant 0 : i32
    return %c0_i32, %c0_i32_0 : i32, i32
  }
  func.func @transform_7(%arg0: i32) -> (i32, i32) {
    %c0_i32 = arith.constant 0 : i32
    %c0_i32_0 = arith.constant 0 : i32
    %c0_i32_1 = arith.constant 0 : i32
    return %c0_i32, %c0_i32_0 : i32, i32
  }
  func.func @transform_8(%arg0: i32) -> (i32, i32) {
    %c0_i32 = arith.constant 0 : i32
    %c0_i32_0 = arith.constant 0 : i32
    %c0_i32_1 = arith.constant 0 : i32
    return %c0_i32, %c0_i32_0 : i32, i32
  }
  func.func @transform_9(%arg0: i32) -> (i32, i32) {
    %c0_i32 = arith.constant 0 : i32
    %c0_i32_0 = arith.constant 0 : i32
    return %arg0, %c0_i32 : i32, i32
  }
}

</mosaic_0001>

<bundles_post_ra>
// kernel: tpu_custom_call.1
= control target key start
LH: loop header
LB: loop body
LE: loop exit
PB: predicated region body
PF: predicated region fallthrough
CT: control target
= control target key end

     0   :  { %s3790_s0 = inlined_call_operand.hbm [shape: bf16[512,128], index: 0, kind: input, shape index: {}]   ;;  %s3791_s1 = inlined_call_operand.hbm [shape: bf16[128,256], index: 1, kind: input, shape index: {}]   ;;  %s3792_s2 = inlined_call_operand.vmem [shape: f32[1,256], index: 2, kind: input, shape index: {}]   ;;  %s3793_s3 = inlined_call_operand.hbm [shape: bf16[256,256], index: 3, kind: input, shape index: {}]   ;;  %s3794_s4 = inlined_call_operand.vmem [shape: f32[1,256], index: 4, kind: input, shape index: {}]   ;;  %s3795_s5 = inlined_call_operand.hbm [shape: bf16[256,256], index: 5, kind: input, shape index: {}]   ;;  %s3796_s6 = inlined_call_operand.vmem [shape: f32[1,256], index: 6, kind: input, shape index: {}]   ;;  %s3797_s7 = inlined_call_operand.hbm [shape: bf16[256,128], index: 7, kind: input, shape index: {}]   ;;  %s3798_s8 = inlined_call_operand.vmem [shape: f32[1,128], index: 8, kind: input, shape index: {}]   ;;  %s3799_s9 = inlined_call_operand.hbm [shape: f32[512,128], index: 9, kind: output, shape index: {}]  }
   0x1   :  { %3806 = sst [smem:[#allocation18_spill]] %s3799_s9 }
   0x2   :  { %14 = vsyncpa [#allocation3], 0 }
   0x3   :  { %16 = vsyncpa [#allocation3 + $0x1], 0 }
   0x4   :  { %17 = vsyncpa [#allocation6], 0 }
   0x5   :  { %18 = vsyncpa [#allocation9], 0 }
   0x6   :  { %19 = vsyncpa [#allocation4], 0 }
   0x7   :  { %21 = vsyncpa [#allocation4 + $0x1], 0  ;;  %s3168_s30 = smov 0   ;;  %s3170_s10 = smov 0  }
   0x8   :  { %s3172_s11 = smov 0   ;;  %s3174_s12 = smov 0  }
   0x9 LB: > { %3807 = sst [smem:[#allocation16_spill]] %s3091_s30  ;;  %s3189_s13 = sadd.s32 4294967295, %s3103_s12   ;;  %s3103_s12 = sphi %s3174_s12, %s3831_s12   ;;  %s3099_s11 = sphi %s3172_s11, %s3830_s11   ;;  %s3095_s10 = sphi %s3170_s10, %s3829_s10   ;;  %s3091_s30 = sphi %s3168_s30, %s3828_s30  }
   0xa   : > { %s2376_s14 = sadd.s32 4294967294, %s3103_s12   ;;  %p47_p0 = scmp.ne.s32.totalorder %s3095_s10, %s3091_s30 }
   0xb   : > { %p3800_p1 = scmp.eq.s32.totalorder %s3189_s13, 0  ;;  %p245_p3 = scmp.eq.s32.totalorder %s2376_s14, 1 }
   0xc   : > { %p2377_p5 = scmp.ge.s32.totalorder %s3103_s12, 1  ;;  %p252_p7 = scmp.lt.s32.totalorder %s3103_s12, 3 }
   0xd   : > { %p3198_p4 = por %p3800_p1, %p47_p0  ;;  %p3203_p6 = por %p245_p3, %p47_p0 }
   0xe   : > { %p3208_p8 = pnand %p2377_p5, %p252_p7  ;;  %s3105_s18 = smov [#allocation5]  }
   0xf   : > { %s3808_s15 = scalar_select %p3198_p4, 1, 0 }
  0x10   : > { %s3809_s16 = scalar_select %p3203_p6, 1, 0 }
  0x11   : > { %s3811_s17 = scalar_select %p3208_p8, 1, 0 }
  0x12   : > { %3810 = sst [smem:[#allocation17_spill]] %s3809_s16  ;;  %s264_s19 = sshll.u32 %s3105_s18, 4  ;;  %s3212_s19 = int_to_ptr.vmem [resolvable:$true] %s264_s19 }
  0x13   : > { %p2661_p9 = pneg %p3208_p8  ;;  %s3106_s21 = smov [#allocation8]  }
  0x14   : > { %s296_s22 = sshll.u32 %s3106_s21, 4  ;;  %s3107_s23 = smov [#allocation7]   ;;  %s3223_s22 = int_to_ptr.vmem [resolvable:$true] %s296_s22 }
  0x15   : > { %p3219_p11 = pnand %p2661_p9, %p3800_p1  ;;  %s3225_s24 = sshll.u32 %s3107_s23, 4  ;;  %s281_s24 = int_to_ptr.vmem [resolvable:$true] %s3225_s24 }
  0x16   : > { %s2887_s27 = scalar_lea.hbm %s3791_s1, 2048 }
  0x17   : > { %p2888_p12 = scmp.ne.s32.totalorder %s3791_s1, %s2887_s27  ;;  %p3235_p13 = pneg %p3219_p11 }
  0x18   : > { %p2894_p5 = scmp.lt.u32.totalorder %s2887_s27, %s3791_s1 }
  0x19   : > { %p2890_p0 = pnand %p3235_p13, %p2888_p12 }
  0x1b   : > { %p2891_p3 = pneg %p2890_p0 }
  0x1d   : > { %p2896_p7 = pnand %p2894_p5, %p2891_p3 }
  0x1f   : > { %2899 = shalt.err (!%p2896_p7)
}
  0x20   : > { %s2900_s23 = scalar_lea.vmem %s3212_s19, 2048  ;;  %p2908_p2 = scmp.lt.s32.totalorder %s3212_s19, %s3212_s19 }
  0x21   : > { %p2901_p9 = scmp.ne.s32.totalorder %s3212_s19, %s2900_s23  ;;  %p2909_p6 = scmp.lt.s32.totalorder %s2900_s23, %s2900_s23 }
  0x23   : > { %p2903_p10 = pnand %p2901_p9, %p3235_p13  ;;  %p2910_p12 = por %p2909_p6, %p2908_p2 }
  0x25   : > { %p2904_p1 = pneg %p2903_p10 }
  0x27   : > { %p2911_p0 = pnand %p2910_p12, %p2904_p1 }
  0x29   : > { %2914 = shalt.err (!%p2911_p0)
}
  0x2a   : > { %s3108_s25 = smov 128   ;;  %s3109_s26 = smov 8  }
  0x2b   : > { %2664 = dma.hbm_to_vmem [thread:$0]  (!%p3219_p11), %s3791_s1, 2048, %s3212_s19, [#allocation6], %s3108_s25, %s3108_s25, %s3109_s26  }
  0x2c   : > { %s2915_s21 = scalar_lea.hbm %s3795_s5, 4096 }
  0x2d   : > { %p2916_p1 = scmp.ne.s32.totalorder %s3795_s5, %s2915_s21  ;;  %p2922_p10 = scmp.lt.u32.totalorder %s2915_s21, %s3795_s5 }
  0x2f   : > { %p2918_p2 = pnand %p2916_p1, %p3235_p13 }
  0x31   : > { %p2919_p6 = pneg %p2918_p2 }
  0x33   : > { %p2924_p3 = pnand %p2922_p10, %p2919_p6 }
  0x35   : > { %2927 = shalt.err (!%p2924_p3)
}
  0x36   : > { %s2928_s19 = scalar_lea.vmem %s3223_s22, 4096  ;;  %p2936_p12 = scmp.lt.s32.totalorder %s3223_s22, %s3223_s22 }
  0x37   : > { %p2929_p5 = scmp.ne.s32.totalorder %s3223_s22, %s2928_s19  ;;  %p2937_p0 = scmp.lt.s32.totalorder %s2928_s19, %s2928_s19 }
  0x39   : > { %p2931_p7 = pnand %p2929_p5, %p3235_p13  ;;  %p2938_p1 = por %p2937_p0, %p2936_p12 }
  0x3b   : > { %p2932_p9 = pneg %p2931_p7 }
  0x3d   : > { %p2939_p2 = pnand %p2938_p1, %p2932_p9 }
  0x3f   : > { %2942 = shalt.err (!%p2939_p2)
}
  0x40   : > { %2670 = dma.hbm_to_vmem [thread:$0]  (!%p3219_p11), %s3795_s5, 4096, %s3223_s22, [#allocation9], %s3108_s25, %s3108_s25, %s3109_s26  }
  0x41   : > { %s2943_s28 = scalar_lea.hbm %s3793_s3, 4096 }
  0x42   : > { %p2944_p6 = scmp.ne.s32.totalorder %s3793_s3, %s2943_s28  ;;  %p2950_p5 = scmp.lt.u32.totalorder %s2943_s28, %s3793_s3 }
  0x44   : > { %p2946_p10 = pnand %p2944_p6, %p3235_p13 }
  0x46   : > { %p2947_p3 = pneg %p2946_p10 }
  0x48   : > { %p2952_p7 = pnand %p2950_p5, %p2947_p3 }
  0x4a   : > { %2955 = shalt.err (!%p2952_p7)
}
  0x4b   : > { %s2956_s19 = scalar_lea.vmem %s281_s24, 4096  ;;  %p2964_p1 = scmp.lt.s32.totalorder %s281_s24, %s281_s24 }
  0x4c   : > { %p2957_p9 = scmp.ne.s32.totalorder %s281_s24, %s2956_s19  ;;  %p2965_p2 = scmp.lt.s32.totalorder %s2956_s19, %s2956_s19 }
  0x4e   : > { %p2959_p12 = pnand %p2957_p9, %p3235_p13  ;;  %p2966_p4 = por %p2965_p2, %p2964_p1 }
  0x50   : > { %p2960_p0 = pneg %p2959_p12 }
  0x52   : > { %p2967_p8 = pnand %p2966_p4, %p2960_p0 }
  0x54   : > { %2970 = shalt.err (!%p2967_p8)
}
  0x55   : > { %2667 = dma.hbm_to_vmem [thread:$0]  (!%p3219_p11), %s3793_s3, 4096, %s281_s24, [#allocation6], %s3108_s25, %s3108_s25, %s3109_s26  }
  0x56   : > { %s3110_s30 = smov [#allocation10]   ;;  %s2971_s29 = scalar_lea.hbm %s3797_s7, 2048 }
  0x57   : > { %s312_s16 = sshll.u32 %s3110_s30, 4  ;;  %p2972_p4 = scmp.ne.s32.totalorder %s3797_s7, %s2971_s29  ;;  %s313_s16 = int_to_ptr.vmem [resolvable:$true] %s312_s16 }
  0x58   : > { %p2978_p10 = scmp.lt.u32.totalorder %s2971_s29, %s3797_s7 }
  0x59   : > { %p2974_p8 = pnand %p2972_p4, %p3235_p13 }
  0x5b   : > { %p2975_p6 = pneg %p2974_p8 }
  0x5d   : > { %p2980_p3 = pnand %p2978_p10, %p2975_p6 }
  0x5f   : > { %2983 = shalt.err (!%p2980_p3)
}
  0x60   : > { %s2984_s24 = scalar_lea.vmem %s313_s16, 2048  ;;  %p2992_p12 = scmp.lt.s32.totalorder %s313_s16, %s313_s16 }
  0x61   : > { %p2985_p5 = scmp.ne.s32.totalorder %s313_s16, %s2984_s24  ;;  %p2993_p0 = scmp.lt.s32.totalorder %s2984_s24, %s2984_s24 }
  0x63   : > { %p2987_p7 = pnand %p2985_p5, %p3235_p13  ;;  %p2994_p1 = por %p2993_p0, %p2992_p12 }
  0x65   : > { %p2988_p9 = pneg %p2987_p7 }
  0x67   : > { %p2995_p2 = pnand %p2994_p1, %p2988_p9 }
  0x69   : > { %2998 = shalt.err (!%p2995_p2)
}
  0x6a   : > { %s3111_s25 = smov 64   ;;  %s3112_s14 = smov 4  }
  0x6b   : > { %2673 = dma.hbm_to_vmem [thread:$0]  (!%p3219_p11), %s3797_s7, 2048, %s313_s16, [#allocation9], %s3111_s25, %s3111_s25, %s3112_s14  }
  0x6c   : > { %s3329_s9 = sadd.s32 1, %s3103_s12   ;;  %s34_s27 = sadd.s32 1, %s3099_s11 }
  0x6d   : > { %s31_s30 = ssub.s32 %s3103_s12, %s3329_s9  ;;  %p41_p4 = scmp.ne.s32.totalorder %s3099_s11, %s3095_s10 }
  0x6e   : > { %p32_p13 = scmp.eq.s32.totalorder %s31_s30, 0  ;;  %p42_p8 = scmp.eq.s32.totalorder %s3103_s12, 0 }
  0x6f   : > { %p3814_p10 = scmp.eq.s32.totalorder %s3189_s13, 1  ;;  %p2686_p5 = scmp.lt.s32.totalorder %s3103_s12, 2 }
  0x70   : > { %s3338_s28 = scalar_select %p32_p13, %s3099_s11, %s34_s27  }
  0x71   : > { %p43_p6 = por %p42_p8, %p41_p4  ;;  %p3342_p3 = por %p3814_p10, %p41_p4 }
  0x72   : > { %s329_s29 = sand.u32 1, %s3099_s11   ;;  %s2511_s16 = sshll.u32 %s3103_s12, 11 }
  0x73   : > { %s2383_s18 = sshll.u32 %s329_s29, 7  ;;  %s3352_s19 = scalar_lea.hbm %s3790_s0, %s2511_s16 }
  0x74   : > { %s333_s24 = scalar_lea.vmem [#allocation2], %s2383_s18  ;;  %p3356_p11 = pnand %p2686_p5, %p43_p6 }
  0x75   : > { %s340_s26 = sshll.u32 %s333_s24, 4  ;;  %s3360_s30 = scalar_lea.sflag [#allocation3], %s329_s29  ;;  %s3354_s26 = int_to_ptr.vmem [resolvable:$true] %s340_s26 }
  0x76   : > { %s2999_s27 = scalar_lea.hbm %s3352_s19, 2048  ;;  %p3001_p9 = pneg %p3356_p11 }
  0x77   : > { %p3000_p7 = scmp.ne.s32.totalorder %s3352_s19, %s2999_s27  ;;  %s3004_s21 = scalar_lea.hbm %s3790_s0, 4096 }
  0x78   : > { %p3005_p1 = scmp.lt.u32.totalorder %s3352_s19, %s3790_s0  ;;  %p3006_p2 = scmp.lt.u32.totalorder %s3004_s21, %s2999_s27 }
  0x79   : > { %p3002_p12 = pnand %p3001_p9, %p3000_p7  ;;  %p3008_p4 = scmp.lt.u32.totalorder %s2999_s27, %s3352_s19 }
  0x7a   : > { %p3007_p13 = por %p3006_p2, %p3005_p1 }
  0x7b   : > { %p3003_p0 = pneg %p3002_p12 }
  0x7c   : > { %p3009_p8 = por %p3008_p4, %p3007_p13 }
  0x7e   : > { %p3010_p6 = pnand %p3009_p8, %p3003_p0 }
  0x80   : > { %3013 = shalt.err (!%p3010_p6)
}
  0x81   : > { %s3014_s29 = scalar_lea.vmem %s3354_s26, 2048  ;;  %s3113_s18 = smov [#allocation2]  }
  0x82   : > { %p3015_p10 = scmp.ne.s32.totalorder %s3354_s26, %s3014_s29  ;;  %s3019_s16 = sshll.u32 %s3113_s18, 4  ;;  %s3020_s16 = int_to_ptr.vmem [resolvable:$false] %s3019_s16 }
  0x83   : > { %s3021_s23 = scalar_lea.vmem %s3020_s16, 4096  ;;  %p3022_p12 = scmp.lt.s32.totalorder %s3354_s26, %s3020_s16 }
  0x84   : > { %p3017_p5 = pnand %p3015_p10, %p3001_p9  ;;  %p3023_p1 = scmp.lt.s32.totalorder %s3021_s23, %s3014_s29 }
  0x86   : > { %p3018_p7 = pneg %p3017_p5  ;;  %p3024_p2 = por %p3023_p1, %p3022_p12 }
  0x88   : > { %p3025_p13 = pnand %p3024_p2, %p3018_p7 }
  0x8a   : > { %3028 = shalt.err (!%p3025_p13)
}
  0x8b   : > { %2677 = dma.hbm_to_vmem [thread:$0]  (!%p3356_p11), %s3352_s19, 2048, %s3354_s26, %s3360_s30, %s3111_s25, %s3111_s25, %s3112_s14  }
  0x8c   : > { %p3817_p9 = scmp.ne.s32.totalorder %s3811_s17, 0 }
  0x8d   : > { %s3394_s27 = sand.u32 (!%p3817_p9), 1, %s3095_s10   ;;  %p3818_p0 = scmp.ne.s32.totalorder (!%p3817_p9), %s3808_s15, 0 }
  0x8e   : > { %352 = sbr.rel (%p3817_p9) target bundleno = 1210 (0x4ba), region = 56  ;;  %s2387_s21 = sshll.u32 (!%p3817_p9), %s3394_s27, 7 }
  0x8f   : > { %s355_s24 = scalar_lea.sflag (!%p3817_p9), [#allocation3], %s3394_s27  ;;  %s3398_s29 = scalar_lea.vmem (!%p3817_p9), [#allocation2], %s2387_s21 }
  0x95   : > { %3074 = dma.done.wait (%p3818_p0), %s355_s24, 2048  }
  0x96   : > { %3076 = vsyncadd (%p3818_p0), %s355_s24, 4294965248  ;;  %p3819_p11 = scmp.eq.s32.totalorder %s3189_s13, 0 }
  0x98   : > { %3078 = dma.done.wait (%p3819_p11), [#allocation6], 6144   ;;  %p3820_p4 = pmov %p3819_p11 }
  0x9a   : > { %3080 = vsyncadd (%p3820_p4), [#allocation6], 4294961152  ;;  %p3821_p8 = pmov %p3820_p4 }
  0x9b   : > { %p3822_p6 = pmov %p3820_p4 }
  0x9c   : > { %3082 = dma.done.wait (%p3821_p8), [#allocation9], 6144  }
  0x9d   : > { %3084 = vsyncadd (%p3822_p6), [#allocation9], 4294961152  ;;  %v3114_v0 = vmov 0   ;;  %v2735_v1 = vld [vmem:[#allocation5 + $0x4] ss:$8 sps:$4 sm:$0xff]   ;;  %v2761_v30 = vld [vmem:[%s3398_s29 + $0x10] sm:$0xff]  }
  0x9e   : > { %680 = vmatprep.mubr.bf16.mxu0 %v3114_v0  ;;  %v2737_v2 = vld [vmem:[#allocation5] ss:$8 sps:$4 sm:$0xff]   ;;  %648 = vmatprep.subr.bf16.mxu0 %v2735_v1  ;;  %v2738_v3 = vld [vmem:[#allocation5 + $0x14] ss:$8 sps:$4 sm:$0xff]   ;;  %v2740_v4 = vld [vmem:[#allocation5 + $0x10] ss:$8 sps:$4 sm:$0xff]  }
  0x9f   : > { %649 = vmatpush1.bf16.msra.mxu0 %v2737_v2  ;;  %v2741_v5 = vld [vmem:[#allocation5 + $0x24] ss:$8 sps:$4 sm:$0xff]   ;;  %v2743_v6 = vld [vmem:[#allocation5 + $0x20] ss:$8 sps:$4 sm:$0xff]   ;;  %v2744_v7 = vld [vmem:[#allocation5 + $0x34] ss:$8 sps:$4 sm:$0xff]  }
  0xa0   : > { %650 = vmatprep.subr.bf16.mxu0 %v2738_v3  ;;  %v2746_v8 = vld [vmem:[#allocation5 + $0x30] ss:$8 sps:$4 sm:$0xff]   ;;  %v2747_v9 = vld [vmem:[#allocation5 + $0x44] ss:$8 sps:$4 sm:$0xff]   ;;  %v2749_v10 = vld [vmem:[#allocation5 + $0x40] ss:$8 sps:$4 sm:$0xff]  }
  0xa1   : > { %v2750_v11 = vld [vmem:[#allocation5 + $0x54] ss:$8 sps:$4 sm:$0xff]   ;;  %v2752_v12 = vld [vmem:[#allocation5 + $0x50] ss:$8 sps:$4 sm:$0xff]   ;;  %v2753_v13 = vld [vmem:[#allocation5 + $0x64] ss:$8 sps:$4 sm:$0xff]  }
  0xa2   : > { %v2755_v14 = vld [vmem:[#allocation5 + $0x60] ss:$8 sps:$4 sm:$0xff]   ;;  %v2756_v15 = vld [vmem:[#allocation5 + $0x74] ss:$8 sps:$4 sm:$0xff]   ;;  %v2758_v16 = vld [vmem:[#allocation5 + $0x70] ss:$8 sps:$4 sm:$0xff]  }
  0xa3   : > { %651 = vmatpush1.bf16.msra.mxu0 %v2740_v4  ;;  %v2775_v17 = vld [vmem:[#allocation7 + $0x4] ss:$8 sps:$4 sm:$0xff]   ;;  %v2777_v18 = vld [vmem:[#allocation7] ss:$8 sps:$4 sm:$0xff]   ;;  %v2778_v19 = vld [vmem:[#allocation7 + $0x14] ss:$8 sps:$4 sm:$0xff]   ;;  %v462_v4 = vlaneseq }
  0xa4   : > { %652 = vmatprep.subr.bf16.mxu0 %v2741_v5  ;;  %1141 = vmatprep.subr.bf16.mxu1 %v2775_v17  ;;  %v2759_v20 = vld [vmem:[%s3398_s29] sm:$0xff]   ;;  %v2780_v21 = vld [vmem:[#allocation7 + $0x10] ss:$8 sps:$4 sm:$0xff]   ;;  %v2784_v24 = vld [vmem:[#allocation7 + $0x34] ss:$8 sps:$4 sm:$0xff]   ;;  %s2392_s22 = sshll.u32 %s3394_s27, 8 }
  0xa5   : > { %1142 = vmatpush1.bf16.msra.mxu1 %v2777_v18  ;;  %v2781_v22 = vld [vmem:[#allocation7 + $0x24] ss:$8 sps:$4 sm:$0xff]   ;;  %v2783_v23 = vld [vmem:[#allocation7 + $0x20] ss:$8 sps:$4 sm:$0xff]   ;;  %v2786_v26 = vld [vmem:[#allocation7 + $0x30] ss:$8 sps:$4 sm:$0xff]  }
  0xa6   : > { %1143 = vmatprep.subr.bf16.mxu1 %v2778_v19  ;;  %v2760_v25 = vld [vmem:[%s3398_s29 + $0x8] sm:$0xff]   ;;  %v2790_v29 = vld [vmem:[#allocation7 + $0x54] ss:$8 sps:$4 sm:$0xff]   ;;  %v2792_v31 = vld [vmem:[#allocation7 + $0x50] ss:$8 sps:$4 sm:$0xff]   ;;  %s3674_s16 = scalar_lea.vmem [#allocation11], %s2392_s22 }
  0xa7   : > { %653 = vmatpush1.bf16.msra.mxu0 %v2743_v6  ;;  %v2787_v27 = vld [vmem:[#allocation7 + $0x44] ss:$8 sps:$4 sm:$0xff]   ;;  %v2789_v28 = vld [vmem:[#allocation7 + $0x40] ss:$8 sps:$4 sm:$0xff]   ;;  %v2796_v34 = vld [vmem:[#allocation7 + $0x74] ss:$8 sps:$4 sm:$0xff]  }
  0xa8   : > { %654 = vmatprep.subr.bf16.mxu0 %v2744_v7  ;;  %v2793_v32 = vld [vmem:[#allocation7 + $0x64] ss:$8 sps:$4 sm:$0xff]   ;;  %v2795_v33 = vld [vmem:[#allocation7 + $0x60] ss:$8 sps:$4 sm:$0xff]   ;;  %v2762_v35 = vld [vmem:[%s3398_s29 + $0x18] sm:$0xff]   ;;  %v463_v7 = vshrl.u32 %v462_v4, 7 }
  0xa9   : > { %1144 = vmatpush1.bf16.msra.mxu1 %v2780_v21  ;;  %v2798_v36 = vld [vmem:[#allocation7 + $0x70] ss:$8 sps:$4 sm:$0xff]   ;;  %v2799_v37 = vld [vmem:[#allocation7 + $0x84] ss:$8 sps:$4 sm:$0xff]   ;;  %v2801_v38 = vld [vmem:[#allocation7 + $0x80] ss:$8 sps:$4 sm:$0xff]  }
  0xaa   : > { %1145 = vmatprep.subr.bf16.mxu1 %v2781_v22  ;;  %v2802_v39 = vld [vmem:[#allocation7 + $0x94] ss:$8 sps:$4 sm:$0xff]   ;;  %v2763_v40 = vld [vmem:[%s3398_s29 + $0x20] sm:$0xff]   ;;  %v2804_v41 = vld [vmem:[#allocation7 + $0x90] ss:$8 sps:$4 sm:$0xff]   ;;  %s2512_s23 = sshll.u32 %s3189_s13, 12 }
  0xab   : > { %655 = vmatpush1.bf16.msra.mxu0 %v2746_v8  ;;  %v2805_v42 = vld [vmem:[#allocation7 + $0xa4] ss:$8 sps:$4 sm:$0xff]   ;;  %v2807_v43 = vld [vmem:[#allocation7 + $0xa0] ss:$8 sps:$4 sm:$0xff]   ;;  %v2808_v44 = vld [vmem:[#allocation7 + $0xb4] ss:$8 sps:$4 sm:$0xff]  }
  0xac   : > { %656 = vmatprep.subr.bf16.mxu0 %v2747_v9  ;;  %v2764_v45 = vld [vmem:[%s3398_s29 + $0x28] sm:$0xff]   ;;  %v2810_v46 = vld [vmem:[#allocation7 + $0xb0] ss:$8 sps:$4 sm:$0xff]   ;;  %v2814_v49 = vld [vmem:[#allocation7 + $0xd4] ss:$8 sps:$4 sm:$0xff]   ;;  %v3444_v8 = vsub.s32 0, %v463_v7 }
  0xad   : > { %1146 = vmatpush1.bf16.msra.mxu1 %v2783_v23  ;;  %v2811_v47 = vld [vmem:[#allocation7 + $0xc4] ss:$8 sps:$4 sm:$0xff]   ;;  %v2813_v48 = vld [vmem:[#allocation7 + $0xc0] ss:$8 sps:$4 sm:$0xff]   ;;  %v2765_v50 = vld [vmem:[%s3398_s29 + $0x30] sm:$0xff]   ;;  %s2265_s21 = sshll.u32 %s3674_s16, 4  ;;  %s3743_s21 = int_to_ptr.vmem [resolvable:$true] %s2265_s21 }
  0xae   : > { %1147 = vmatprep.subr.bf16.mxu1 %v2784_v24  ;;  %v2766_v51 = vld [vmem:[%s3398_s29 + $0x38] sm:$0xff]   ;;  %v2767_v52 = vld [vmem:[%s3398_s29 + $0x40] sm:$0xff]   ;;  %v2768_v53 = vld [vmem:[%s3398_s29 + $0x48] sm:$0xff]   ;;  %s3823_s15 = sld [smem:[#allocation18_spill]]  ;;  %s2252_s13 = scalar_lea.sflag [#allocation4], %s3394_s27 }
  0xaf   : > { %657 = vmatpush1.bf16.msra.mxu0 %v2749_v10  ;;  %v2769_v54 = vld [vmem:[%s3398_s29 + $0x50] sm:$0xff]   ;;  %v2770_v56 = vld [vmem:[%s3398_s29 + $0x58] sm:$0xff]   ;;  %v2817_v57 = vld [vmem:[#allocation7 + $0xe4] ss:$8 sps:$4 sm:$0xff]   ;;  %v3449_v10 = vsub.s32 1, %v463_v7  ;;  %s3029_s25 = scalar_lea.vmem %s3743_s21, 4096 }
  0xb0   : > { %658 = vmatprep.subr.bf16.mxu0 %v2750_v11  ;;  %v2816_v55 = vld [vmem:[#allocation7 + $0xd0] ss:$8 sps:$4 sm:$0xff]   ;;  %v2819_v58 = vld [vmem:[#allocation7 + $0xe0] ss:$8 sps:$4 sm:$0xff]   ;;  %v2820_v59 = vld [vmem:[#allocation7 + $0xf4] ss:$8 sps:$4 sm:$0xff]   ;;  %p3030_p10 = scmp.ne.s32.totalorder %s3743_s21, %s3029_s25 }
  0xb1   : > { %1148 = vmatpush1.bf16.msra.mxu1 %v2786_v26  ;;  %v2822_v60 = vld [vmem:[#allocation7 + $0xf0] ss:$8 sps:$4 sm:$0xff]   ;;  %v2771_v61 = vld [vmem:[%s3398_s29 + $0x60] sm:$0xff]   ;;  %v2772_v62 = vld [vmem:[%s3398_s29 + $0x68] sm:$0xff]   ;;  %s3115_s14 = smov [#allocation11]  }
  0xb2   : > { %1149 = vmatprep.subr.bf16.mxu1 %v2787_v27  ;;  %v2773_v63 = vld [vmem:[%s3398_s29 + $0x70] sm:$0xff]   ;;  %v2774_v1 = vld [vmem:[%s3398_s29 + $0x78] sm:$0xff]   ;;  %v2823_v2 = vld [vmem:[#allocation8] ss:$8 sps:$4 sm:$0xff]   ;;  %p3031_p5 = pnand %p3030_p10, %p3342_p3  ;;  %s3033_s19 = sshll.u32 %s3115_s14, 4  ;;  %s3034_s19 = int_to_ptr.vmem [resolvable:$false] %s3033_s19 }
  0xb3   : > { %659 = vmatpush1.bf16.msra.mxu0 %v2752_v12  ;;  %v2825_v3 = vld [vmem:[#allocation8 + $0x4] ss:$8 sps:$4 sm:$0xff]   ;;  %v2826_v5 = vld [vmem:[#allocation8 + $0x10] ss:$8 sps:$4 sm:$0xff]   ;;  %v2828_v6 = vld [vmem:[#allocation8 + $0x14] ss:$8 sps:$4 sm:$0xff]   ;;  %p3036_p12 = scmp.lt.s32.totalorder %s3743_s21, %s3034_s19 }
  0xb4   : > { %660 = vmatprep.subr.bf16.mxu0 %v2753_v13  ;;  %v460_v9 = vld [vmem:[%s3792_s2] sm:$0x3]  ;;  %v2831_v11 = vld [vmem:[#allocation8 + $0x24] ss:$8 sps:$4 sm:$0xff]   ;;  %v2840_v26 = vld [vmem:[#allocation8 + $0x54] ss:$8 sps:$4 sm:$0xff]   ;;  %s3741_s17 = scalar_lea.hbm %s3823_s15, %s2512_s23  ;;  %p3032_p7 = pneg %p3031_p5 }
  0xb5   : > { %1150 = vmatpush1.bf16.msra.mxu1 %v2789_v28  ;;  %v3452_v12 = vrot.slane %v460_v9, %v3444_v8  ;;  %v3455_v13 = vrot.slane %v460_v9, %v3449_v10  ;;  %v2835_v23 = vld [vmem:[#allocation8 + $0x40] ss:$8 sps:$4 sm:$0xff]   ;;  %v2837_v24 = vld [vmem:[#allocation8 + $0x44] ss:$8 sps:$4 sm:$0xff]   ;;  %s3035_s26 = scalar_lea.vmem %s3034_s19, 8192 }
  0xb6   : > { %1151 = vmatprep.subr.bf16.mxu1 %v2790_v29  ;;  %v2855_v9 = vld [vmem:[#allocation8 + $0xa4] ss:$8 sps:$4 sm:$0xff]   ;;  %p3037_p1 = scmp.lt.s32.totalorder %s3035_s26, %s3029_s25 }
  0xb7   : > { %661 = vmatpush1.bf16.msra.mxu0 %v2755_v14 }
  0xb8   : > { %662 = vmatprep.subr.bf16.mxu0 %v2756_v15  ;;  %v2832_v15 = vld [vmem:[#allocation8 + $0x30] ss:$8 sps:$4 sm:$0xff]   ;;  %p3038_p2 = por %p3037_p1, %p3036_p12 }
  0xb9   : > { %1152 = vmatpush1.bf16.msra.mxu1 %v2792_v31 }
  0xba   : > { %1153 = vmatprep.subr.bf16.mxu1 %v2793_v32  ;;  %v2838_v32 = vld [vmem:[#allocation8 + $0x50] ss:$8 sps:$4 sm:$0xff]   ;;  %p3039_p13 = pnand %p3038_p2, %p3032_p7 }
  0xbb   : > { %663 = vmatpush1.bf16.msra.mxu0 %v2758_v16  ;;  %v2834_v16 = vld [vmem:[#allocation8 + $0x34] ss:$8 sps:$4 sm:$0xff]  }
  0xbc   : > { %1634 = vmatprep.subr.bf16.mxu0 %v2825_v3 }
  0xbd   : > { %1154 = vmatpush1.bf16.msra.mxu1 %v2795_v33 }
  0xbe   : > { %681 = vmatmul.mubr.bf16.vlgmr.msra.gmra.mrb[0].mxu0 %v2759_v20  ;;  %1155 = vmatprep.subr.bf16.mxu1 %v2796_v34 }
  0xbf   : > { %690 = vmatprep.mubr.bf16.mxu0 %v3114_v0  ;;  %1635 = vmatpush1.bf16.msra.mxu0 %v2823_v2 }
  0xc0   : > { %1636 = vmatprep.subr.bf16.mxu0 %v2828_v6 }
  0xc1   : > { %1156 = vmatpush1.bf16.msra.mxu1 %v2798_v36 }
  0xc2   : > { %1157 = vmatprep.subr.bf16.mxu1 %v2799_v37 }
  0xc3   : > { %1637 = vmatpush1.bf16.msra.mxu0 %v2826_v5  ;;  %v2850_v5 = vld [vmem:[#allocation8 + $0x90] ss:$8 sps:$4 sm:$0xff]  }
  0xc4   : > { %1638 = vmatprep.subr.bf16.mxu0 %v2831_v11 }
  0xc5   : > { %1158 = vmatpush1.bf16.msra.mxu1 %v2801_v38 }
  0xc6   : > { %691 = vmatmul.mubr.bf16.gmra.mrb[4].mxu0 %v2760_v25  ;;  %1159 = vmatprep.subr.bf16.mxu1 %v2802_v39 }
  0xc7   : > { %700 = vmatprep.mubr.bf16.mxu0 %v3114_v0 }
  0xc9   : > { %1160 = vmatpush1.bf16.msra.mxu1 %v2804_v41 }
  0xca   : > { %1161 = vmatprep.subr.bf16.mxu1 %v2805_v42  ;;  %v2841_v42 = vld [vmem:[#allocation8 + $0x60] ss:$8 sps:$4 sm:$0xff]  }
  0xcd   : > { %1162 = vmatpush1.bf16.msra.mxu1 %v2807_v43 }
  0xce   : > { %701 = vmatmul.mubr.bf16.gmra.mrb[8].mxu0 %v2761_v30  ;;  %1163 = vmatprep.subr.bf16.mxu1 %v2808_v44  ;;  %v2846_v44 = vld [vmem:[#allocation8 + $0x74] ss:$8 sps:$4 sm:$0xff]  }
  0xcf   : > { %710 = vmatprep.mubr.bf16.mxu0 %v3114_v0 }
  0xd1   : > { %1164 = vmatpush1.bf16.msra.mxu1 %v2810_v46 }
  0xd2   : > { %1165 = vmatprep.subr.bf16.mxu1 %v2811_v47 }
  0xd5   : > { %1166 = vmatpush1.bf16.msra.mxu1 %v2813_v48 }
  0xd6   : > { %711 = vmatmul.mubr.bf16.gmra.mrb[12].mxu0 %v2762_v35  ;;  %1167 = vmatprep.subr.bf16.mxu1 %v2814_v49  ;;  %v2843_v35 = vld [vmem:[#allocation8 + $0x64] ss:$8 sps:$4 sm:$0xff]  }
  0xd7   : > { %720 = vmatprep.mubr.bf16.mxu0 %v3114_v0 }
  0xd9   : > { %1168 = vmatpush1.bf16.msra.mxu1 %v2816_v55 }
  0xda   : > { %1169 = vmatprep.subr.bf16.mxu1 %v2817_v57 }
  0xdd   : > { %1170 = vmatpush1.bf16.msra.mxu1 %v2819_v58 }
  0xde   : > { %721 = vmatmul.mubr.bf16.gmra.mrb[16].mxu0 %v2763_v40  ;;  %1171 = vmatprep.subr.bf16.mxu1 %v2820_v59 }
  0xdf   : > { %730 = vmatprep.mubr.bf16.mxu0 %v3114_v0 }
  0xe1   : > { %1172 = vmatpush1.bf16.msra.mxu1 %v2822_v60  ;;  %v2847_v60 = vld [vmem:[#allocation8 + $0x80] ss:$8 sps:$4 sm:$0xff]  }
  0xe6   : > { %731 = vmatmul.mubr.bf16.gmra.mrb[20].mxu0 %v2764_v45 }
  0xe7   : > { %740 = vmatprep.mubr.bf16.mxu0 %v3114_v0 }
  0xee   : > { %741 = vmatmul.mubr.bf16.gmra.mrb[24].mxu0 %v2765_v50  ;;  %v2844_v50 = vld [vmem:[#allocation8 + $0x70] ss:$8 sps:$4 sm:$0xff]  }
  0xef   : > { %750 = vmatprep.mubr.bf16.mxu0 %v3114_v0 }
  0xf6   : > { %751 = vmatmul.mubr.bf16.gmra.mrb[28].mxu0 %v2766_v51 }
  0xf7   : > { %760 = vmatprep.mubr.bf16.mxu0 %v3114_v0 }
  0xfe   : > { %761 = vmatmul.mubr.bf16.gmra.mrb[32].mxu0 %v2767_v52 }
  0xff   : > { %770 = vmatprep.mubr.bf16.mxu0 %v3114_v0 }
 0x106   : > { %771 = vmatmul.mubr.bf16.gmra.mrb[36].mxu0 %v2768_v53  ;;  %v2849_v53 = vld [vmem:[#allocation8 + $0x84] ss:$8 sps:$4 sm:$0xff]  }
 0x107   : > { %780 = vmatprep.mubr.bf16.mxu0 %v3114_v0 }
 0x10e   : > { %781 = vmatmul.mubr.bf16.gmra.mrb[40].mxu0 %v2769_v54 }
 0x10f   : > { %790 = vmatprep.mubr.bf16.mxu0 %v3114_v0 }
 0x116   : > { %791 = vmatmul.mubr.bf16.gmra.mrb[44].mxu0 %v2770_v56 }
 0x117   : > { %800 = vmatprep.mubr.bf16.mxu0 %v3114_v0 }
 0x11e   : > { %801 = vmatmul.mubr.bf16.gmra.mrb[48].mxu0 %v2771_v61 }
 0x11f   : > { %810 = vmatprep.mubr.bf16.mxu0 %v3114_v0 }
 0x126   : > { %811 = vmatmul.mubr.bf16.gmra.mrb[52].mxu0 %v2772_v62  ;;  %v2852_v62 = vld [vmem:[#allocation8 + $0x94] ss:$8 sps:$4 sm:$0xff]  }
 0x127   : > { %820 = vmatprep.mubr.bf16.mxu0 %v3114_v0 }
 0x12e   : > { %821 = vmatmul.mubr.bf16.gmra.mrb[56].mxu0 %v2773_v63 }
 0x12f   : > { %830 = vmatprep.mubr.bf16.mxu0 %v3114_v0  ;;  %v2829_v0 = vld [vmem:[#allocation8 + $0x20] ss:$8 sps:$4 sm:$0xff]  }
 0x130   : > { %1639 = vmatpush1.bf16.msra.mxu0 %v2829_v0 }
 0x131   : > { %1640 = vmatprep.subr.bf16.mxu0 %v2834_v16 }
 0x134   : > { %1641 = vmatpush1.bf16.msra.mxu0 %v2832_v15 }
 0x135   : > { %1642 = vmatprep.subr.bf16.mxu0 %v2837_v24 }
 0x136   : > { %831 = vmatmul.mubr.bf16.gmra.mrb[60].mxu0 %v2774_v1 }
 0x138   : > { %1643 = vmatpush1.bf16.msra.mxu0 %v2835_v23 }
 0x139   : > { %1644 = vmatprep.subr.bf16.mxu0 %v2840_v26  ;;  %v2856_v26 = vld [vmem:[#allocation8 + $0xb0] ss:$8 sps:$4 sm:$0xff]  }
 0x13c   : > { %1645 = vmatpush1.bf16.msra.mxu0 %v2838_v32 }
 0x13d   : > { %1646 = vmatprep.subr.bf16.mxu0 %v2843_v35 }
 0x140   : > { %1647 = vmatpush1.bf16.msra.mxu0 %v2841_v42 }
 0x141   : > { %1648 = vmatprep.subr.bf16.mxu0 %v2846_v44  ;;  %v2862_v44 = vld [vmem:[#allocation8 + $0xd0] ss:$8 sps:$4 sm:$0xff]  }
 0x144   : > { %1649 = vmatpush1.bf16.msra.mxu0 %v2844_v50 }
 0x145   : > { %1650 = vmatprep.subr.bf16.mxu0 %v2849_v53 }
 0x148   : > { %1651 = vmatpush1.bf16.msra.mxu0 %v2847_v60 }
 0x149   : > { %1652 = vmatprep.subr.bf16.mxu0 %v2852_v62 }
 0x14c   : > { %1653 = vmatpush1.bf16.msra.mxu0 %v2850_v5 }
 0x14d   : > { %1654 = vmatprep.subr.bf16.mxu0 %v2855_v9 }
 0x191   : > { %v682_v14 = vpop.f32.mrb[0].mxu0 }
 0x192   : > { %v683_v17 = vadd.f32 %v682_v14, %v3452_v12  ;;  %v684_v18 = vpop.f32.mrb[1].mxu0 }
 0x193   : > { %v685_v19 = vadd.f32 %v684_v18, %v3455_v13  ;;  %v686_v20 = vpop.f32.mrb[2].mxu0  ;;  %v2853_v18 = vld [vmem:[#allocation8 + $0xa0] ss:$8 sps:$4 sm:$0xff]  }
 0x194   : > { %v687_v21 = vadd.f32 %v686_v20, %v3452_v12  ;;  %v688_v22 = vpop.f32.mrb[3].mxu0  ;;  %v841_v27 = vmax.f32 %v683_v17, 0.0  ;;  %v2858_v20 = vld [vmem:[#allocation8 + $0xb4] ss:$8 sps:$4 sm:$0xff]   ;;  %1655 = vmatpush1.bf16.msra.mxu0 %v2853_v18 }
 0x195   : > { %v689_v25 = vadd.f32 %v688_v22, %v3455_v13  ;;  %v842_v29 = vmax.f32 %v685_v19, 0.0  ;;  %1656 = vmatprep.subr.bf16.mxu0 %v2858_v20 }
 0x196   : > { %v843_v28 = vmax.f32 %v687_v21, 0.0 }
 0x197   : > { %v844_v30 = vmax.f32 %v689_v25, 0.0 }
 0x198   : > { %v905_v31 = vpack.c.bf16 %v843_v28, %v841_v27  ;;  %1657 = vmatpush1.bf16.msra.mxu0 %v2856_v26 }
 0x199   : > { %v692_v33 = vpop.f32.mrb[4].mxu0  ;;  %v906_v34 = vpack.c.bf16 %v844_v30, %v842_v29  ;;  %v2861_v29 = vld [vmem:[#allocation8 + $0xc4] ss:$8 sps:$4 sm:$0xff]  }
 0x19a   : > { %v693_v36 = vadd.f32 %v692_v33, %v3452_v12  ;;  %v694_v37 = vpop.f32.mrb[5].mxu0  ;;  %1658 = vmatprep.subr.bf16.mxu0 %v2861_v29 }
 0x19b   : > { %v695_v38 = vadd.f32 %v694_v37, %v3455_v13  ;;  %v696_v39 = vpop.f32.mrb[6].mxu0  ;;  %1173 = vmatprep.mubr.bf16.mxu1 %v906_v34 }
 0x19c   : > { %v697_v40 = vadd.f32 %v696_v39, %v3452_v12  ;;  %v698_v41 = vpop.f32.mrb[7].mxu0  ;;  %1174 = vmatmul.mubr.bf16.vlgmr.msra.gmra.mrb[0].mxu1 %v905_v31  ;;  %v845_v45 = vmax.f32 %v693_v36, 0.0  ;;  %v2859_v36 = vld [vmem:[#allocation8 + $0xc0] ss:$8 sps:$4 sm:$0xff]  }
 0x19d   : > { %v699_v43 = vadd.f32 %v698_v41, %v3455_v13  ;;  %v846_v47 = vmax.f32 %v695_v38, 0.0  ;;  %v2864_v38 = vld [vmem:[#allocation8 + $0xd4] ss:$8 sps:$4 sm:$0xff]   ;;  %1659 = vmatpush1.bf16.msra.mxu0 %v2859_v36 }
 0x19e   : > { %v847_v46 = vmax.f32 %v697_v40, 0.0  ;;  %1660 = vmatprep.subr.bf16.mxu0 %v2864_v38 }
 0x19f   : > { %v848_v48 = vmax.f32 %v699_v43, 0.0 }
 0x1a0   : > { %v907_v49 = vpack.c.bf16 %v847_v46, %v845_v45 }
 0x1a1   : > { %v908_v51 = vpack.c.bf16 %v848_v48, %v846_v47  ;;  %v702_v52 = vpop.f32.mrb[8].mxu0  ;;  %v2867_v47 = vld [vmem:[#allocation8 + $0xe4] ss:$8 sps:$4 sm:$0xff]   ;;  %1661 = vmatpush1.bf16.msra.mxu0 %v2862_v44 }
 0x1a2   : > { %v703_v54 = vadd.f32 %v702_v52, %v3452_v12  ;;  %v704_v55 = vpop.f32.mrb[9].mxu0  ;;  %1662 = vmatprep.subr.bf16.mxu0 %v2867_v47 }
 0x1a3   : > { %v705_v56 = vadd.f32 %v704_v55, %v3455_v13  ;;  %v706_v57 = vpop.f32.mrb[10].mxu0  ;;  %1183 = vmatprep.mubr.bf16.mxu1 %v908_v51 }
 0x1a4   : > { %v707_v58 = vadd.f32 %v706_v57, %v3452_v12  ;;  %v708_v59 = vpop.f32.mrb[11].mxu0  ;;  %1184 = vmatmul.mubr.bf16.gmra.mrb[4].mxu1 %v907_v49  ;;  %v849_v63 = vmax.f32 %v703_v54, 0.0  ;;  %v2865_v54 = vld [vmem:[#allocation8 + $0xe0] ss:$8 sps:$4 sm:$0xff]  }
 0x1a5   : > { %v709_v61 = vadd.f32 %v708_v59, %v3455_v13  ;;  %v850_v2 = vmax.f32 %v705_v56, 0.0  ;;  %1663 = vmatpush1.bf16.msra.mxu0 %v2865_v54 }
 0x1a6   : > { %v851_v1 = vmax.f32 %v707_v58, 0.0 }
 0x1a7   : > { %v852_v3 = vmax.f32 %v709_v61, 0.0 }
 0x1a8   : > { %v909_v4 = vpack.c.bf16 %v851_v1, %v849_v63 }
 0x1a9   : > { %v910_v6 = vpack.c.bf16 %v852_v3, %v850_v2  ;;  %v712_v7 = vpop.f32.mrb[12].mxu0 }
 0x1aa   : > { %v713_v0 = vadd.f32 %v712_v7, %v3452_v12  ;;  %v714_v11 = vpop.f32.mrb[13].mxu0 }
 0x1ab   : > { %v715_v14 = vadd.f32 %v714_v11, %v3455_v13  ;;  %v716_v15 = vpop.f32.mrb[14].mxu0  ;;  %1193 = vmatprep.mubr.bf16.mxu1 %v910_v6 }
 0x1ac   : > { %v717_v16 = vadd.f32 %v716_v15, %v3452_v12  ;;  %v718_v17 = vpop.f32.mrb[15].mxu0  ;;  %1194 = vmatmul.mubr.bf16.gmra.mrb[8].mxu1 %v909_v4  ;;  %v853_v21 = vmax.f32 %v713_v0, 0.0 }
 0x1ad   : > { %v719_v19 = vadd.f32 %v718_v17, %v3455_v13  ;;  %v854_v23 = vmax.f32 %v715_v14, 0.0 }
 0x1ae   : > { %v855_v22 = vmax.f32 %v717_v16, 0.0 }
 0x1af   : > { %v856_v24 = vmax.f32 %v719_v19, 0.0 }
 0x1b0   : > { %v911_v25 = vpack.c.bf16 %v855_v22, %v853_v21 }
 0x1b1   : > { %v912_v27 = vpack.c.bf16 %v856_v24, %v854_v23  ;;  %v722_v28 = vpop.f32.mrb[16].mxu0 }
 0x1b2   : > { %v723_v30 = vadd.f32 %v722_v28, %v3452_v12  ;;  %v724_v31 = vpop.f32.mrb[17].mxu0 }
 0x1b3   : > { %v725_v32 = vadd.f32 %v724_v31, %v3455_v13  ;;  %v726_v33 = vpop.f32.mrb[18].mxu0  ;;  %1203 = vmatprep.mubr.bf16.mxu1 %v912_v27 }
 0x1b4   : > { %v727_v34 = vadd.f32 %v726_v33, %v3452_v12  ;;  %v728_v35 = vpop.f32.mrb[19].mxu0  ;;  %1204 = vmatmul.mubr.bf16.gmra.mrb[12].mxu1 %v911_v25  ;;  %v857_v39 = vmax.f32 %v723_v30, 0.0 }
 0x1b5   : > { %v729_v37 = vadd.f32 %v728_v35, %v3455_v13  ;;  %v858_v41 = vmax.f32 %v725_v32, 0.0 }
 0x1b6   : > { %v859_v40 = vmax.f32 %v727_v34, 0.0 }
 0x1b7   : > { %v860_v42 = vmax.f32 %v729_v37, 0.0 }
 0x1b8   : > { %v913_v43 = vpack.c.bf16 %v859_v40, %v857_v39 }
 0x1b9   : > { %v914_v45 = vpack.c.bf16 %v860_v42, %v858_v41  ;;  %v732_v46 = vpop.f32.mrb[20].mxu0 }
 0x1ba   : > { %v733_v48 = vadd.f32 %v732_v46, %v3452_v12  ;;  %v734_v49 = vpop.f32.mrb[21].mxu0 }
 0x1bb   : > { %v735_v50 = vadd.f32 %v734_v49, %v3455_v13  ;;  %v736_v51 = vpop.f32.mrb[22].mxu0  ;;  %1213 = vmatprep.mubr.bf16.mxu1 %v914_v45 }
 0x1bc   : > { %v737_v52 = vadd.f32 %v736_v51, %v3452_v12  ;;  %v738_v53 = vpop.f32.mrb[23].mxu0  ;;  %1214 = vmatmul.mubr.bf16.gmra.mrb[16].mxu1 %v913_v43  ;;  %v861_v56 = vmax.f32 %v733_v48, 0.0 }
 0x1bd   : > { %v739_v55 = vadd.f32 %v738_v53, %v3455_v13  ;;  %v862_v58 = vmax.f32 %v735_v50, 0.0 }
 0x1be   : > { %v863_v57 = vmax.f32 %v737_v52, 0.0 }
 0x1bf   : > { %v864_v59 = vmax.f32 %v739_v55, 0.0 }
 0x1c0   : > { %v915_v60 = vpack.c.bf16 %v863_v57, %v861_v56 }
 0x1c1   : > { %v916_v61 = vpack.c.bf16 %v864_v59, %v862_v58  ;;  %v742_v62 = vpop.f32.mrb[24].mxu0 }
 0x1c2   : > { %v743_v63 = vadd.f32 %v742_v62, %v3452_v12  ;;  %v744_v1 = vpop.f32.mrb[25].mxu0 }
 0x1c3   : > { %v745_v2 = vadd.f32 %v744_v1, %v3455_v13  ;;  %v746_v3 = vpop.f32.mrb[26].mxu0  ;;  %1223 = vmatprep.mubr.bf16.mxu1 %v916_v61 }
 0x1c4   : > { %v747_v4 = vadd.f32 %v746_v3, %v3452_v12  ;;  %v748_v5 = vpop.f32.mrb[27].mxu0  ;;  %1224 = vmatmul.mubr.bf16.gmra.mrb[20].mxu1 %v915_v60  ;;  %v865_v7 = vmax.f32 %v743_v63, 0.0 }
 0x1c5   : > { %v749_v6 = vadd.f32 %v748_v5, %v3455_v13  ;;  %v866_v0 = vmax.f32 %v745_v2, 0.0 }
 0x1c6   : > { %v867_v9 = vmax.f32 %v747_v4, 0.0 }
 0x1c7   : > { %v868_v11 = vmax.f32 %v749_v6, 0.0 }
 0x1c8   : > { %v917_v14 = vpack.c.bf16 %v867_v9, %v865_v7 }
 0x1c9   : > { %v918_v15 = vpack.c.bf16 %v868_v11, %v866_v0  ;;  %v752_v16 = vpop.f32.mrb[28].mxu0 }
 0x1ca   : > { %v753_v17 = vadd.f32 %v752_v16, %v3452_v12  ;;  %v754_v18 = vpop.f32.mrb[29].mxu0 }
 0x1cb   : > { %v755_v19 = vadd.f32 %v754_v18, %v3455_v13  ;;  %v756_v20 = vpop.f32.mrb[30].mxu0  ;;  %1233 = vmatprep.mubr.bf16.mxu1 %v918_v15 }
 0x1cc   : > { %v757_v21 = vadd.f32 %v756_v20, %v3452_v12  ;;  %v758_v22 = vpop.f32.mrb[31].mxu0  ;;  %1234 = vmatmul.mubr.bf16.gmra.mrb[24].mxu1 %v917_v14  ;;  %v869_v24 = vmax.f32 %v753_v17, 0.0 }
 0x1cd   : > { %v759_v23 = vadd.f32 %v758_v22, %v3455_v13  ;;  %v870_v26 = vmax.f32 %v755_v19, 0.0 }
 0x1ce   : > { %v871_v25 = vmax.f32 %v757_v21, 0.0 }
 0x1cf   : > { %v872_v27 = vmax.f32 %v759_v23, 0.0 }
 0x1d0   : > { %v919_v28 = vpack.c.bf16 %v871_v25, %v869_v24 }
 0x1d1   : > { %v920_v29 = vpack.c.bf16 %v872_v27, %v870_v26  ;;  %v762_v30 = vpop.f32.mrb[32].mxu0 }
 0x1d2   : > { %v763_v31 = vadd.f32 %v762_v30, %v3452_v12  ;;  %v764_v32 = vpop.f32.mrb[33].mxu0 }
 0x1d3   : > { %v765_v33 = vadd.f32 %v764_v32, %v3455_v13  ;;  %v766_v34 = vpop.f32.mrb[34].mxu0  ;;  %1243 = vmatprep.mubr.bf16.mxu1 %v920_v29 }
 0x1d4   : > { %v767_v35 = vadd.f32 %v766_v34, %v3452_v12  ;;  %v768_v36 = vpop.f32.mrb[35].mxu0  ;;  %1244 = vmatmul.mubr.bf16.gmra.mrb[28].mxu1 %v919_v28  ;;  %v873_v38 = vmax.f32 %v763_v31, 0.0 }
 0x1d5   : > { %v769_v37 = vadd.f32 %v768_v36, %v3455_v13  ;;  %v874_v40 = vmax.f32 %v765_v33, 0.0  ;;  %v2870_v33 = vld [vmem:[#allocation8 + $0xf4] ss:$8 sps:$4 sm:$0xff]  }
 0x1d6   : > { %v875_v39 = vmax.f32 %v767_v35, 0.0  ;;  %v2868_v35 = vld [vmem:[#allocation8 + $0xf0] ss:$8 sps:$4 sm:$0xff]   ;;  %1664 = vmatprep.subr.bf16.mxu0 %v2870_v33 }
 0x1d7   : > { %v876_v41 = vmax.f32 %v769_v37, 0.0  ;;  %1665 = vmatpush1.bf16.msra.mxu0 %v2868_v35 }
 0x1d8   : > { %v921_v42 = vpack.c.bf16 %v875_v39, %v873_v38 }
 0x1d9   : > { %v922_v43 = vpack.c.bf16 %v876_v41, %v874_v40  ;;  %v772_v44 = vpop.f32.mrb[36].mxu0 }
 0x1da   : > { %v773_v45 = vadd.f32 %v772_v44, %v3452_v12  ;;  %v774_v46 = vpop.f32.mrb[37].mxu0 }
 0x1db   : > { %v775_v47 = vadd.f32 %v774_v46, %v3455_v13  ;;  %v776_v48 = vpop.f32.mrb[38].mxu0  ;;  %1253 = vmatprep.mubr.bf16.mxu1 %v922_v43 }
 0x1dc   : > { %v777_v49 = vadd.f32 %v776_v48, %v3452_v12  ;;  %v778_v50 = vpop.f32.mrb[39].mxu0  ;;  %1254 = vmatmul.mubr.bf16.gmra.mrb[32].mxu1 %v921_v42  ;;  %v877_v52 = vmax.f32 %v773_v45, 0.0 }
 0x1dd   : > { %v779_v51 = vadd.f32 %v778_v50, %v3455_v13  ;;  %v878_v54 = vmax.f32 %v775_v47, 0.0 }
 0x1de   : > { %v879_v53 = vmax.f32 %v777_v49, 0.0 }
 0x1df   : > { %v880_v55 = vmax.f32 %v779_v51, 0.0 }
 0x1e0   : > { %v923_v56 = vpack.c.bf16 %v879_v53, %v877_v52 }
 0x1e1   : > { %v924_v57 = vpack.c.bf16 %v880_v55, %v878_v54  ;;  %v782_v58 = vpop.f32.mrb[40].mxu0 }
 0x1e2   : > { %v783_v59 = vadd.f32 %v782_v58, %v3452_v12  ;;  %v784_v60 = vpop.f32.mrb[41].mxu0 }
 0x1e3   : > { %v785_v61 = vadd.f32 %v784_v60, %v3455_v13  ;;  %v786_v62 = vpop.f32.mrb[42].mxu0  ;;  %1263 = vmatprep.mubr.bf16.mxu1 %v924_v57 }
 0x1e4   : > { %v787_v63 = vadd.f32 %v786_v62, %v3452_v12  ;;  %v788_v1 = vpop.f32.mrb[43].mxu0  ;;  %1264 = vmatmul.mubr.bf16.gmra.mrb[36].mxu1 %v923_v56  ;;  %v881_v3 = vmax.f32 %v783_v59, 0.0 }
 0x1e5   : > { %v789_v2 = vadd.f32 %v788_v1, %v3455_v13  ;;  %v882_v5 = vmax.f32 %v785_v61, 0.0 }
 0x1e6   : > { %v883_v4 = vmax.f32 %v787_v63, 0.0 }
 0x1e7   : > { %v884_v6 = vmax.f32 %v789_v2, 0.0 }
 0x1e8   : > { %v925_v7 = vpack.c.bf16 %v883_v4, %v881_v3 }
 0x1e9   : > { %v926_v9 = vpack.c.bf16 %v884_v6, %v882_v5  ;;  %v792_v0 = vpop.f32.mrb[44].mxu0 }
 0x1ea   : > { %v793_v11 = vadd.f32 %v792_v0, %v3452_v12  ;;  %v794_v14 = vpop.f32.mrb[45].mxu0 }
 0x1eb   : > { %v795_v15 = vadd.f32 %v794_v14, %v3455_v13  ;;  %v796_v16 = vpop.f32.mrb[46].mxu0  ;;  %1273 = vmatprep.mubr.bf16.mxu1 %v926_v9 }
 0x1ec   : > { %v797_v17 = vadd.f32 %v796_v16, %v3452_v12  ;;  %v798_v18 = vpop.f32.mrb[47].mxu0  ;;  %1274 = vmatmul.mubr.bf16.gmra.mrb[40].mxu1 %v925_v7  ;;  %v885_v20 = vmax.f32 %v793_v11, 0.0 }
 0x1ed   : > { %v799_v19 = vadd.f32 %v798_v18, %v3455_v13  ;;  %v886_v22 = vmax.f32 %v795_v15, 0.0 }
 0x1ee   : > { %v887_v21 = vmax.f32 %v797_v17, 0.0 }
 0x1ef   : > { %v888_v23 = vmax.f32 %v799_v19, 0.0 }
 0x1f0   : > { %v927_v24 = vpack.c.bf16 %v887_v21, %v885_v20 }
 0x1f1   : > { %v928_v25 = vpack.c.bf16 %v888_v23, %v886_v22  ;;  %v802_v26 = vpop.f32.mrb[48].mxu0 }
 0x1f2   : > { %v803_v27 = vadd.f32 %v802_v26, %v3452_v12  ;;  %v804_v28 = vpop.f32.mrb[49].mxu0  ;;  %v2872_v26 = vld [vmem:[#allocation10] sm:$0xff]  }
 0x1f3   : > { %v805_v29 = vadd.f32 %v804_v28, %v3455_v13  ;;  %v806_v30 = vpop.f32.mrb[50].mxu0  ;;  %1283 = vmatprep.mubr.bf16.mxu1 %v928_v25  ;;  %v2871_v25 = vld [vmem:[#allocation10 + $0x40] sm:$0xff]  }
 0x1f4   : > { %v807_v31 = vadd.f32 %v806_v30, %v3452_v12  ;;  %v808_v32 = vpop.f32.mrb[51].mxu0  ;;  %1284 = vmatmul.mubr.bf16.gmra.mrb[44].mxu1 %v927_v24  ;;  %v889_v36 = vmax.f32 %v803_v27, 0.0  ;;  %v969_v24 = vld [vmem:[%s3794_s4] sm:$0x3]  ;;  %2625 = vmatprep.subr.bf16.mxu1 %v2871_v25 }
 0x1f5   : > { %v809_v34 = vadd.f32 %v808_v32, %v3455_v13  ;;  %v890_v38 = vmax.f32 %v805_v29, 0.0  ;;  %2513 = vmatprep.subr.bf16.mxu0 %v2871_v25  ;;  %2633 = vmatpush3.bf16.msra.mxu1 %v2872_v26 }
 0x1f6   : > { %v891_v37 = vmax.f32 %v807_v31, 0.0 }
 0x1f7   : > { %v892_v39 = vmax.f32 %v809_v34, 0.0  ;;  %v2873_v34 = vld [vmem:[#allocation10 + $0x48] sm:$0xff]  }
 0x1f8   : > { %v929_v40 = vpack.c.bf16 %v891_v37, %v889_v36  ;;  %v2874_v36 = vld [vmem:[#allocation10 + $0x8] sm:$0xff]   ;;  %2626 = vmatprep.subr.bf16.mxu1 %v2873_v34 }
 0x1f9   : > { %v930_v41 = vpack.c.bf16 %v892_v39, %v890_v38  ;;  %v812_v42 = vpop.f32.mrb[52].mxu0  ;;  %v2875_v39 = vld [vmem:[#allocation10 + $0x50] sm:$0xff]   ;;  %2634 = vmatpush3.bf16.msra.mxu1 %v2874_v36 }
 0x1fa   : > { %v813_v43 = vadd.f32 %v812_v42, %v3452_v12  ;;  %v814_v44 = vpop.f32.mrb[53].mxu0  ;;  %2627 = vmatprep.subr.bf16.mxu1 %v2875_v39 }
 0x1fb   : > { %v815_v45 = vadd.f32 %v814_v44, %v3455_v13  ;;  %v816_v46 = vpop.f32.mrb[54].mxu0  ;;  %1293 = vmatprep.mubr.bf16.mxu1 %v930_v41 }
 0x1fc   : > { %v817_v47 = vadd.f32 %v816_v46, %v3452_v12  ;;  %v818_v48 = vpop.f32.mrb[55].mxu0  ;;  %1294 = vmatmul.mubr.bf16.gmra.mrb[48].mxu1 %v929_v40  ;;  %v893_v50 = vmax.f32 %v813_v43, 0.0 }
 0x1fd   : > { %v819_v49 = vadd.f32 %v818_v48, %v3455_v13  ;;  %v894_v52 = vmax.f32 %v815_v45, 0.0  ;;  %v2876_v45 = vld [vmem:[#allocation10 + $0x10] sm:$0xff]   ;;  %v2877_v48 = vld [vmem:[#allocation10 + $0x58] sm:$0xff]  }
 0x1fe   : > { %v895_v51 = vmax.f32 %v817_v47, 0.0  ;;  %2635 = vmatpush3.bf16.msra.mxu1 %v2876_v45 }
 0x1ff   : > { %v896_v53 = vmax.f32 %v819_v49, 0.0  ;;  %2628 = vmatprep.subr.bf16.mxu1 %v2877_v48 }
 0x200   : > { %v931_v54 = vpack.c.bf16 %v895_v51, %v893_v50 }
 0x201   : > { %v932_v55 = vpack.c.bf16 %v896_v53, %v894_v52  ;;  %v822_v56 = vpop.f32.mrb[56].mxu0 }
 0x202   : > { %v823_v57 = vadd.f32 %v822_v56, %v3452_v12  ;;  %v824_v58 = vpop.f32.mrb[57].mxu0 }
 0x203   : > { %v825_v59 = vadd.f32 %v824_v58, %v3455_v13  ;;  %v826_v60 = vpop.f32.mrb[58].mxu0  ;;  %1303 = vmatprep.mubr.bf16.mxu1 %v932_v55 }
 0x204   : > { %v827_v61 = vadd.f32 %v826_v60, %v3452_v12  ;;  %v828_v62 = vpop.f32.mrb[59].mxu0  ;;  %1304 = vmatmul.mubr.bf16.gmra.mrb[52].mxu1 %v931_v54  ;;  %v897_v1 = vmax.f32 %v823_v57, 0.0  ;;  %v2878_v54 = vld [vmem:[#allocation10 + $0x18] sm:$0xff]   ;;  %v2879_v57 = vld [vmem:[#allocation10 + $0x60] sm:$0xff]  }
 0x205   : > { %v829_v63 = vadd.f32 %v828_v62, %v3455_v13  ;;  %v898_v3 = vmax.f32 %v825_v59, 0.0  ;;  %2636 = vmatpush3.bf16.msra.mxu1 %v2878_v54 }
 0x206   : > { %v899_v2 = vmax.f32 %v827_v61, 0.0  ;;  %2629 = vmatprep.subr.bf16.mxu1 %v2879_v57 }
 0x207   : > { %v900_v4 = vmax.f32 %v829_v63, 0.0  ;;  %v2880_v63 = vld [vmem:[#allocation10 + $0x20] sm:$0xff]  }
 0x208   : > { %v933_v5 = vpack.c.bf16 %v899_v2, %v897_v1 }
 0x209   : > { %v934_v6 = vpack.c.bf16 %v900_v4, %v898_v3  ;;  %v832_v7 = vpop.f32.mrb[60].mxu0  ;;  %v2881_v3 = vld [vmem:[#allocation10 + $0x68] sm:$0xff]   ;;  %2637 = vmatpush3.bf16.msra.mxu1 %v2880_v63 }
 0x20a   : > { %v833_v9 = vadd.f32 %v832_v7, %v3452_v12  ;;  %v834_v0 = vpop.f32.mrb[61].mxu0  ;;  %2630 = vmatprep.subr.bf16.mxu1 %v2881_v3 }
 0x20b   : > { %v835_v11 = vadd.f32 %v834_v0, %v3455_v13  ;;  %v836_v14 = vpop.f32.mrb[62].mxu0  ;;  %1313 = vmatprep.mubr.bf16.mxu1 %v934_v6  ;;  %v2882_v0 = vld [vmem:[#allocation10 + $0x28] sm:$0xff]  }
 0x20c   : > { %v837_v15 = vadd.f32 %v836_v14, %v3452_v12  ;;  %v838_v16 = vpop.f32.mrb[63].mxu0  ;;  %1314 = vmatmul.mubr.bf16.gmra.mrb[56].mxu1 %v933_v5  ;;  %v901_v18 = vmax.f32 %v833_v9, 0.0  ;;  %v3525_v12 = vrot.slane %v969_v24, %v3444_v8 }
 0x20d   : > { %v839_v17 = vadd.f32 %v838_v16, %v3455_v13  ;;  %v902_v20 = vmax.f32 %v835_v11, 0.0  ;;  %v3528_v13 = vrot.slane %v969_v24, %v3449_v10  ;;  %2638 = vmatpush3.bf16.msra.mxu1 %v2882_v0 }
 0x20e   : > { %v903_v19 = vmax.f32 %v837_v15, 0.0  ;;  %v2883_v15 = vld [vmem:[#allocation10 + $0x70] sm:$0xff]  }
 0x20f   : > { %v904_v21 = vmax.f32 %v839_v17, 0.0  ;;  %2631 = vmatprep.subr.bf16.mxu1 %v2883_v15 }
 0x210   : > { %v935_v22 = vpack.c.bf16 %v903_v19, %v901_v18 }
 0x211   : > { %v936_v23 = vpack.c.bf16 %v904_v21, %v902_v20  ;;  %v2884_v21 = vld [vmem:[#allocation10 + $0x30] sm:$0xff]  }
 0x212   : > { %2639 = vmatpush3.bf16.msra.mxu1 %v2884_v21 }
 0x213   : > { %1323 = vmatprep.mubr.bf16.mxu1 %v936_v23 }
 0x214   : > { %1324 = vmatmul.mubr.bf16.gmra.mrb[60].mxu1 %v935_v22 }
 0x26f   : > { %v1175_v27 = vpop.f32.mrb[0].mxu1 }
 0x270   : > { %v1176_v28 = vadd.f32 %v1175_v27, %v3525_v12  ;;  %v1177_v29 = vpop.f32.mrb[1].mxu1 }
 0x271   : > { %v1178_v30 = vadd.f32 %v1177_v29, %v3528_v13  ;;  %v1179_v31 = vpop.f32.mrb[2].mxu1 }
 0x272   : > { %v1180_v32 = vadd.f32 %v1179_v31, %v3525_v12  ;;  %v1181_v33 = vpop.f32.mrb[3].mxu1  ;;  %v1334_v37 = vmax.f32 %v1176_v28, 0.0 }
 0x273   : > { %v1182_v35 = vadd.f32 %v1181_v33, %v3528_v13  ;;  %v1335_v40 = vmax.f32 %v1178_v30, 0.0 }
 0x274   : > { %v1336_v38 = vmax.f32 %v1180_v32, 0.0 }
 0x275   : > { %v1337_v41 = vmax.f32 %v1182_v35, 0.0 }
 0x276   : > { %v1398_v42 = vpack.c.bf16 %v1336_v38, %v1334_v37 }
 0x277   : > { %v1399_v43 = vpack.c.bf16 %v1337_v41, %v1335_v40  ;;  %v1185_v44 = vpop.f32.mrb[4].mxu1 }
 0x278   : > { %v1186_v46 = vadd.f32 %v1185_v44, %v3525_v12  ;;  %v1187_v47 = vpop.f32.mrb[5].mxu1 }
 0x279   : > { %v1188_v49 = vadd.f32 %v1187_v47, %v3528_v13  ;;  %v1189_v50 = vpop.f32.mrb[6].mxu1  ;;  %1666 = vmatprep.mubr.bf16.mxu0 %v1399_v43 }
 0x27a   : > { %v1190_v51 = vadd.f32 %v1189_v50, %v3525_v12  ;;  %v1191_v52 = vpop.f32.mrb[7].mxu1  ;;  %1667 = vmatmul.mubr.bf16.vlgmr.msra.gmra.mrb[64].mxu0 %v1398_v42  ;;  %v1338_v55 = vmax.f32 %v1186_v46, 0.0 }
 0x27b   : > { %v1192_v53 = vadd.f32 %v1191_v52, %v3528_v13  ;;  %2514 = vmatpush3.bf16.msra.mxu0 %v2872_v26  ;;  %v1339_v58 = vmax.f32 %v1188_v49, 0.0 }
 0x27c   : > { %v1340_v56 = vmax.f32 %v1190_v51, 0.0  ;;  %2515 = vmatprep.subr.bf16.mxu0 %v2873_v34 }
 0x27d   : > { %v1341_v59 = vmax.f32 %v1192_v53, 0.0 }
 0x27e   : > { %v1400_v60 = vpack.c.bf16 %v1340_v56, %v1338_v55 }
 0x27f   : > { %v1401_v61 = vpack.c.bf16 %v1341_v59, %v1339_v58  ;;  %v1195_v62 = vpop.f32.mrb[8].mxu1  ;;  %2516 = vmatpush3.bf16.msra.mxu0 %v2874_v36 }
 0x280   : > { %v1196_v1 = vadd.f32 %v1195_v62, %v3525_v12  ;;  %v1197_v2 = vpop.f32.mrb[9].mxu1  ;;  %2517 = vmatprep.subr.bf16.mxu0 %v2875_v39 }
 0x281   : > { %v1198_v4 = vadd.f32 %v1197_v2, %v3528_v13  ;;  %v1199_v5 = vpop.f32.mrb[10].mxu1  ;;  %1676 = vmatprep.mubr.bf16.mxu0 %v1401_v61 }
 0x282   : > { %v1200_v6 = vadd.f32 %v1199_v5, %v3525_v12  ;;  %v1201_v7 = vpop.f32.mrb[11].mxu1  ;;  %1677 = vmatmul.mubr.bf16.gmra.mrb[68].mxu0 %v1400_v60  ;;  %v1342_v11 = vmax.f32 %v1196_v1, 0.0 }
 0x283   : > { %v1202_v9 = vadd.f32 %v1201_v7, %v3528_v13  ;;  %2518 = vmatpush3.bf16.msra.mxu0 %v2876_v45  ;;  %v1343_v16 = vmax.f32 %v1198_v4, 0.0 }
 0x284   : > { %v1344_v14 = vmax.f32 %v1200_v6, 0.0  ;;  %2519 = vmatprep.subr.bf16.mxu0 %v2877_v48 }
 0x285   : > { %v1345_v17 = vmax.f32 %v1202_v9, 0.0 }
 0x286   : > { %v1402_v18 = vpack.c.bf16 %v1344_v14, %v1342_v11 }
 0x287   : > { %v1403_v19 = vpack.c.bf16 %v1345_v17, %v1343_v16  ;;  %v1205_v20 = vpop.f32.mrb[12].mxu1  ;;  %2520 = vmatpush3.bf16.msra.mxu0 %v2878_v54 }
 0x288   : > { %v1206_v22 = vadd.f32 %v1205_v20, %v3525_v12  ;;  %v1207_v23 = vpop.f32.mrb[13].mxu1  ;;  %2521 = vmatprep.subr.bf16.mxu0 %v2879_v57 }
 0x289   : > { %v1208_v24 = vadd.f32 %v1207_v23, %v3528_v13  ;;  %v1209_v25 = vpop.f32.mrb[14].mxu1  ;;  %1686 = vmatprep.mubr.bf16.mxu0 %v1403_v19 }
 0x28a   : > { %v1210_v26 = vadd.f32 %v1209_v25, %v3525_v12  ;;  %v1211_v27 = vpop.f32.mrb[15].mxu1  ;;  %1687 = vmatmul.mubr.bf16.gmra.mrb[72].mxu0 %v1402_v18  ;;  %v1346_v29 = vmax.f32 %v1206_v22, 0.0 }
 0x28b   : > { %v1212_v28 = vadd.f32 %v1211_v27, %v3528_v13  ;;  %2522 = vmatpush3.bf16.msra.mxu0 %v2880_v63  ;;  %v1347_v31 = vmax.f32 %v1208_v24, 0.0 }
 0x28c   : > { %v1348_v30 = vmax.f32 %v1210_v26, 0.0  ;;  %2523 = vmatprep.subr.bf16.mxu0 %v2881_v3 }
 0x28d   : > { %v1349_v32 = vmax.f32 %v1212_v28, 0.0 }
 0x28e   : > { %v1404_v33 = vpack.c.bf16 %v1348_v30, %v1346_v29 }
 0x28f   : > { %v1405_v34 = vpack.c.bf16 %v1349_v32, %v1347_v31  ;;  %v1215_v35 = vpop.f32.mrb[16].mxu1  ;;  %2524 = vmatpush3.bf16.msra.mxu0 %v2882_v0 }
 0x290   : > { %v1216_v36 = vadd.f32 %v1215_v35, %v3525_v12  ;;  %v1217_v37 = vpop.f32.mrb[17].mxu1  ;;  %2525 = vmatprep.subr.bf16.mxu0 %v2883_v15 }
 0x291   : > { %v1218_v38 = vadd.f32 %v1217_v37, %v3528_v13  ;;  %v1219_v39 = vpop.f32.mrb[18].mxu1  ;;  %1696 = vmatprep.mubr.bf16.mxu0 %v1405_v34 }
 0x292   : > { %v1220_v40 = vadd.f32 %v1219_v39, %v3525_v12  ;;  %v1221_v41 = vpop.f32.mrb[19].mxu1  ;;  %1697 = vmatmul.mubr.bf16.gmra.mrb[76].mxu0 %v1404_v33  ;;  %v1350_v43 = vmax.f32 %v1216_v36, 0.0 }
 0x293   : > { %v1222_v42 = vadd.f32 %v1221_v41, %v3528_v13  ;;  %2526 = vmatpush3.bf16.msra.mxu0 %v2884_v21  ;;  %v1351_v45 = vmax.f32 %v1218_v38, 0.0 }
 0x294   : > { %v1352_v44 = vmax.f32 %v1220_v40, 0.0 }
 0x295   : > { %v1353_v46 = vmax.f32 %v1222_v42, 0.0 }
 0x296   : > { %v1406_v47 = vpack.c.bf16 %v1352_v44, %v1350_v43 }
 0x297   : > { %v1407_v48 = vpack.c.bf16 %v1353_v46, %v1351_v45  ;;  %v1225_v49 = vpop.f32.mrb[20].mxu1 }
 0x298   : > { %v1226_v50 = vadd.f32 %v1225_v49, %v3525_v12  ;;  %v1227_v51 = vpop.f32.mrb[21].mxu1 }
 0x299   : > { %v1228_v52 = vadd.f32 %v1227_v51, %v3528_v13  ;;  %v1229_v53 = vpop.f32.mrb[22].mxu1  ;;  %1706 = vmatprep.mubr.bf16.mxu0 %v1407_v48 }
 0x29a   : > { %v1230_v54 = vadd.f32 %v1229_v53, %v3525_v12  ;;  %v1231_v55 = vpop.f32.mrb[23].mxu1  ;;  %1707 = vmatmul.mubr.bf16.gmra.mrb[80].mxu0 %v1406_v47  ;;  %v1354_v57 = vmax.f32 %v1226_v50, 0.0 }
 0x29b   : > { %v1232_v56 = vadd.f32 %v1231_v55, %v3528_v13  ;;  %v1355_v59 = vmax.f32 %v1228_v52, 0.0 }
 0x29c   : > { %v1356_v58 = vmax.f32 %v1230_v54, 0.0 }
 0x29d   : > { %v1357_v60 = vmax.f32 %v1232_v56, 0.0 }
 0x29e   : > { %v1408_v61 = vpack.c.bf16 %v1356_v58, %v1354_v57 }
 0x29f   : > { %v1409_v62 = vpack.c.bf16 %v1357_v60, %v1355_v59  ;;  %v1235_v63 = vpop.f32.mrb[24].mxu1 }
 0x2a0   : > { %v1236_v1 = vadd.f32 %v1235_v63, %v3525_v12  ;;  %v1237_v2 = vpop.f32.mrb[25].mxu1 }
 0x2a1   : > { %v1238_v3 = vadd.f32 %v1237_v2, %v3528_v13  ;;  %v1239_v4 = vpop.f32.mrb[26].mxu1  ;;  %1716 = vmatprep.mubr.bf16.mxu0 %v1409_v62 }
 0x2a2   : > { %v1240_v5 = vadd.f32 %v1239_v4, %v3525_v12  ;;  %v1241_v6 = vpop.f32.mrb[27].mxu1  ;;  %1717 = vmatmul.mubr.bf16.gmra.mrb[84].mxu0 %v1408_v61  ;;  %v1358_v9 = vmax.f32 %v1236_v1, 0.0 }
 0x2a3   : > { %v1242_v7 = vadd.f32 %v1241_v6, %v3528_v13  ;;  %v1359_v11 = vmax.f32 %v1238_v3, 0.0 }
 0x2a4   : > { %v1360_v0 = vmax.f32 %v1240_v5, 0.0 }
 0x2a5   : > { %v1361_v14 = vmax.f32 %v1242_v7, 0.0 }
 0x2a6   : > { %v1410_v15 = vpack.c.bf16 %v1360_v0, %v1358_v9 }
 0x2a7   : > { %v1411_v16 = vpack.c.bf16 %v1361_v14, %v1359_v11  ;;  %v1245_v17 = vpop.f32.mrb[28].mxu1 }
 0x2a8   : > { %v1246_v18 = vadd.f32 %v1245_v17, %v3525_v12  ;;  %v1247_v19 = vpop.f32.mrb[29].mxu1 }
 0x2a9   : > { %v1248_v20 = vadd.f32 %v1247_v19, %v3528_v13  ;;  %v1249_v21 = vpop.f32.mrb[30].mxu1  ;;  %1726 = vmatprep.mubr.bf16.mxu0 %v1411_v16 }
 0x2aa   : > { %v1250_v22 = vadd.f32 %v1249_v21, %v3525_v12  ;;  %v1251_v23 = vpop.f32.mrb[31].mxu1  ;;  %1727 = vmatmul.mubr.bf16.gmra.mrb[88].mxu0 %v1410_v15  ;;  %v1362_v25 = vmax.f32 %v1246_v18, 0.0 }
 0x2ab   : > { %v1252_v24 = vadd.f32 %v1251_v23, %v3528_v13  ;;  %v1363_v27 = vmax.f32 %v1248_v20, 0.0 }
 0x2ac   : > { %v1364_v26 = vmax.f32 %v1250_v22, 0.0 }
 0x2ad   : > { %v1365_v28 = vmax.f32 %v1252_v24, 0.0 }
 0x2ae   : > { %v1412_v29 = vpack.c.bf16 %v1364_v26, %v1362_v25 }
 0x2af   : > { %v1413_v30 = vpack.c.bf16 %v1365_v28, %v1363_v27  ;;  %v1255_v31 = vpop.f32.mrb[32].mxu1 }
 0x2b0   : > { %v1256_v32 = vadd.f32 %v1255_v31, %v3525_v12  ;;  %v1257_v33 = vpop.f32.mrb[33].mxu1 }
 0x2b1   : > { %v1258_v34 = vadd.f32 %v1257_v33, %v3528_v13  ;;  %v1259_v35 = vpop.f32.mrb[34].mxu1  ;;  %1736 = vmatprep.mubr.bf16.mxu0 %v1413_v30 }
 0x2b2   : > { %v1260_v36 = vadd.f32 %v1259_v35, %v3525_v12  ;;  %v1261_v37 = vpop.f32.mrb[35].mxu1  ;;  %1737 = vmatmul.mubr.bf16.gmra.mrb[92].mxu0 %v1412_v29  ;;  %v1366_v39 = vmax.f32 %v1256_v32, 0.0 }
 0x2b3   : > { %v1262_v38 = vadd.f32 %v1261_v37, %v3528_v13  ;;  %v1367_v41 = vmax.f32 %v1258_v34, 0.0  ;;  %v2885_v34 = vld [vmem:[#allocation10 + $0x78] sm:$0xff]  }
 0x2b4   : > { %v1368_v40 = vmax.f32 %v1260_v36, 0.0  ;;  %v2886_v36 = vld [vmem:[#allocation10 + $0x38] sm:$0xff]   ;;  %2527 = vmatprep.subr.bf16.mxu0 %v2885_v34  ;;  %2632 = vmatprep.subr.bf16.mxu1 %v2885_v34 }
 0x2b5   : > { %v1369_v42 = vmax.f32 %v1262_v38, 0.0  ;;  %2528 = vmatpush3.bf16.msra.mxu0 %v2886_v36  ;;  %2640 = vmatpush3.bf16.msra.mxu1 %v2886_v36 }
 0x2b6   : > { %v1414_v43 = vpack.c.bf16 %v1368_v40, %v1366_v39 }
 0x2b7   : > { %v1415_v44 = vpack.c.bf16 %v1369_v42, %v1367_v41  ;;  %v1265_v45 = vpop.f32.mrb[36].mxu1 }
 0x2b8   : > { %v1266_v46 = vadd.f32 %v1265_v45, %v3525_v12  ;;  %v1267_v47 = vpop.f32.mrb[37].mxu1 }
 0x2b9   : > { %v1268_v48 = vadd.f32 %v1267_v47, %v3528_v13  ;;  %v1269_v49 = vpop.f32.mrb[38].mxu1  ;;  %1746 = vmatprep.mubr.bf16.mxu0 %v1415_v44 }
 0x2ba   : > { %v1270_v50 = vadd.f32 %v1269_v49, %v3525_v12  ;;  %v1271_v51 = vpop.f32.mrb[39].mxu1  ;;  %1747 = vmatmul.mubr.bf16.gmra.mrb[96].mxu0 %v1414_v43  ;;  %v1370_v53 = vmax.f32 %v1266_v46, 0.0 }
 0x2bb   : > { %v1272_v52 = vadd.f32 %v1271_v51, %v3528_v13  ;;  %v1371_v55 = vmax.f32 %v1268_v48, 0.0 }
 0x2bc   : > { %v1372_v54 = vmax.f32 %v1270_v50, 0.0 }
 0x2bd   : > { %v1373_v56 = vmax.f32 %v1272_v52, 0.0 }
 0x2be   : > { %v1416_v57 = vpack.c.bf16 %v1372_v54, %v1370_v53 }
 0x2bf   : > { %v1417_v58 = vpack.c.bf16 %v1373_v56, %v1371_v55  ;;  %v1275_v59 = vpop.f32.mrb[40].mxu1 }
 0x2c0   : > { %v1276_v60 = vadd.f32 %v1275_v59, %v3525_v12  ;;  %v1277_v61 = vpop.f32.mrb[41].mxu1 }
 0x2c1   : > { %v1278_v62 = vadd.f32 %v1277_v61, %v3528_v13  ;;  %v1279_v63 = vpop.f32.mrb[42].mxu1  ;;  %1756 = vmatprep.mubr.bf16.mxu0 %v1417_v58 }
 0x2c2   : > { %v1280_v1 = vadd.f32 %v1279_v63, %v3525_v12  ;;  %v1281_v2 = vpop.f32.mrb[43].mxu1  ;;  %1757 = vmatmul.mubr.bf16.gmra.mrb[100].mxu0 %v1416_v57  ;;  %v1374_v4 = vmax.f32 %v1276_v60, 0.0 }
 0x2c3   : > { %v1282_v3 = vadd.f32 %v1281_v2, %v3528_v13  ;;  %v1375_v6 = vmax.f32 %v1278_v62, 0.0 }
 0x2c4   : > { %v1376_v5 = vmax.f32 %v1280_v1, 0.0 }
 0x2c5   : > { %v1377_v7 = vmax.f32 %v1282_v3, 0.0 }
 0x2c6   : > { %v1418_v9 = vpack.c.bf16 %v1376_v5, %v1374_v4 }
 0x2c7   : > { %v1419_v0 = vpack.c.bf16 %v1377_v7, %v1375_v6  ;;  %v1285_v11 = vpop.f32.mrb[44].mxu1 }
 0x2c8   : > { %v1286_v14 = vadd.f32 %v1285_v11, %v3525_v12  ;;  %v1287_v15 = vpop.f32.mrb[45].mxu1 }
 0x2c9   : > { %v1288_v16 = vadd.f32 %v1287_v15, %v3528_v13  ;;  %v1289_v17 = vpop.f32.mrb[46].mxu1  ;;  %1766 = vmatprep.mubr.bf16.mxu0 %v1419_v0 }
 0x2ca   : > { %v1290_v18 = vadd.f32 %v1289_v17, %v3525_v12  ;;  %v1291_v19 = vpop.f32.mrb[47].mxu1  ;;  %1767 = vmatmul.mubr.bf16.gmra.mrb[104].mxu0 %v1418_v9  ;;  %v1378_v21 = vmax.f32 %v1286_v14, 0.0 }
 0x2cb   : > { %v1292_v20 = vadd.f32 %v1291_v19, %v3528_v13  ;;  %v1379_v23 = vmax.f32 %v1288_v16, 0.0 }
 0x2cc   : > { %v1380_v22 = vmax.f32 %v1290_v18, 0.0 }
 0x2cd   : > { %v1381_v24 = vmax.f32 %v1292_v20, 0.0 }
 0x2ce   : > { %v1420_v25 = vpack.c.bf16 %v1380_v22, %v1378_v21 }
 0x2cf   : > { %v1421_v26 = vpack.c.bf16 %v1381_v24, %v1379_v23  ;;  %v1295_v27 = vpop.f32.mrb[48].mxu1 }
 0x2d0   : > { %v1296_v28 = vadd.f32 %v1295_v27, %v3525_v12  ;;  %v1297_v29 = vpop.f32.mrb[49].mxu1 }
 0x2d1   : > { %v1298_v30 = vadd.f32 %v1297_v29, %v3528_v13  ;;  %v1299_v31 = vpop.f32.mrb[50].mxu1  ;;  %1776 = vmatprep.mubr.bf16.mxu0 %v1421_v26 }
 0x2d2   : > { %v1300_v32 = vadd.f32 %v1299_v31, %v3525_v12  ;;  %v1301_v33 = vpop.f32.mrb[51].mxu1  ;;  %1777 = vmatmul.mubr.bf16.gmra.mrb[108].mxu0 %v1420_v25  ;;  %v1382_v37 = vmax.f32 %v1296_v28, 0.0  ;;  %v1462_v25 = vld [vmem:[%s3796_s6] sm:$0x3] }
 0x2d3   : > { %v1302_v35 = vadd.f32 %v1301_v33, %v3528_v13  ;;  %v1383_v39 = vmax.f32 %v1298_v30, 0.0  ;;  %v3598_v26 = vrot.slane %v1462_v25, %v3444_v8 }
 0x2d4   : > { %v1384_v38 = vmax.f32 %v1300_v32, 0.0 }
 0x2d5   : > { %v1385_v40 = vmax.f32 %v1302_v35, 0.0 }
 0x2d6   : > { %v1422_v41 = vpack.c.bf16 %v1384_v38, %v1382_v37 }
 0x2d7   : > { %v1423_v42 = vpack.c.bf16 %v1385_v40, %v1383_v39  ;;  %v1305_v43 = vpop.f32.mrb[52].mxu1 }
 0x2d8   : > { %v1306_v44 = vadd.f32 %v1305_v43, %v3525_v12  ;;  %v1307_v45 = vpop.f32.mrb[53].mxu1 }
 0x2d9   : > { %v1308_v46 = vadd.f32 %v1307_v45, %v3528_v13  ;;  %v1309_v47 = vpop.f32.mrb[54].mxu1  ;;  %1786 = vmatprep.mubr.bf16.mxu0 %v1423_v42 }
 0x2da   : > { %v1310_v48 = vadd.f32 %v1309_v47, %v3525_v12  ;;  %v1311_v49 = vpop.f32.mrb[55].mxu1  ;;  %1787 = vmatmul.mubr.bf16.gmra.mrb[112].mxu0 %v1422_v41  ;;  %v1386_v51 = vmax.f32 %v1306_v44, 0.0 }
 0x2db   : > { %v1312_v50 = vadd.f32 %v1311_v49, %v3528_v13  ;;  %v1387_v53 = vmax.f32 %v1308_v46, 0.0 }
 0x2dc   : > { %v1388_v52 = vmax.f32 %v1310_v48, 0.0 }
 0x2dd   : > { %v1389_v54 = vmax.f32 %v1312_v50, 0.0 }
 0x2de   : > { %v1424_v55 = vpack.c.bf16 %v1388_v52, %v1386_v51 }
 0x2df   : > { %v1425_v56 = vpack.c.bf16 %v1389_v54, %v1387_v53  ;;  %v1315_v57 = vpop.f32.mrb[56].mxu1 }
 0x2e0   : > { %v1316_v58 = vadd.f32 %v1315_v57, %v3525_v12  ;;  %v1317_v59 = vpop.f32.mrb[57].mxu1 }
 0x2e1   : > { %v1318_v60 = vadd.f32 %v1317_v59, %v3528_v13  ;;  %v1319_v61 = vpop.f32.mrb[58].mxu1  ;;  %1796 = vmatprep.mubr.bf16.mxu0 %v1425_v56 }
 0x2e2   : > { %v1320_v62 = vadd.f32 %v1319_v61, %v3525_v12  ;;  %v1321_v63 = vpop.f32.mrb[59].mxu1  ;;  %1797 = vmatmul.mubr.bf16.gmra.mrb[116].mxu0 %v1424_v55  ;;  %v1390_v2 = vmax.f32 %v1316_v58, 0.0 }
 0x2e3   : > { %v1322_v1 = vadd.f32 %v1321_v63, %v3528_v13  ;;  %v1391_v4 = vmax.f32 %v1318_v60, 0.0 }
 0x2e4   : > { %v1392_v3 = vmax.f32 %v1320_v62, 0.0 }
 0x2e5   : > { %v1393_v5 = vmax.f32 %v1322_v1, 0.0 }
 0x2e6   : > { %v1426_v6 = vpack.c.bf16 %v1392_v3, %v1390_v2 }
 0x2e7   : > { %v1427_v7 = vpack.c.bf16 %v1393_v5, %v1391_v4  ;;  %v1325_v9 = vpop.f32.mrb[60].mxu1 }
 0x2e8   : > { %v1326_v0 = vadd.f32 %v1325_v9, %v3525_v12  ;;  %v1327_v11 = vpop.f32.mrb[61].mxu1 }
 0x2e9   : > { %v1328_v14 = vadd.f32 %v1327_v11, %v3528_v13  ;;  %v1329_v15 = vpop.f32.mrb[62].mxu1  ;;  %1806 = vmatprep.mubr.bf16.mxu0 %v1427_v7 }
 0x2ea   : > { %v1330_v16 = vadd.f32 %v1329_v15, %v3525_v12  ;;  %v1331_v17 = vpop.f32.mrb[63].mxu1  ;;  %1807 = vmatmul.mubr.bf16.gmra.mrb[120].mxu0 %v1426_v6  ;;  %v1394_v19 = vmax.f32 %v1326_v0, 0.0  ;;  %v3601_v12 = vrot.slane %v1462_v25, %v3449_v10 }
 0x2eb   : > { %v1332_v18 = vadd.f32 %v1331_v17, %v3528_v13  ;;  %v1395_v21 = vmax.f32 %v1328_v14, 0.0 }
 0x2ec   : > { %v1396_v20 = vmax.f32 %v1330_v16, 0.0 }
 0x2ed   : > { %v1397_v22 = vmax.f32 %v1332_v18, 0.0 }
 0x2ee   : > { %v1428_v23 = vpack.c.bf16 %v1396_v20, %v1394_v19 }
 0x2ef   : > { %v1429_v24 = vpack.c.bf16 %v1397_v22, %v1395_v21 }
 0x2f1   : > { %1816 = vmatprep.mubr.bf16.mxu0 %v1429_v24 }
 0x2f2   : > { %1817 = vmatmul.mubr.bf16.gmra.mrb[124].mxu0 %v1428_v23 }
 0x34d   : > { %v1668_v27 = vpop.f32.mrb[64].mxu0 }
 0x34e   : > { %v1669_v13 = vadd.f32 %v1668_v27, %v3598_v26  ;;  %v1670_v28 = vpop.f32.mrb[65].mxu0 }
 0x34f   : > { %v1671_v29 = vadd.f32 %v1670_v28, %v3601_v12  ;;  %v1672_v30 = vpop.f32.mrb[66].mxu0 }
 0x350   : > { %v1673_v31 = vadd.f32 %v1672_v30, %v3598_v26  ;;  %v1674_v32 = vpop.f32.mrb[67].mxu0  ;;  %v1827_v34 = vmax.f32 %v1669_v13, 0.0 }
 0x351   : > { %v1675_v33 = vadd.f32 %v1674_v32, %v3601_v12  ;;  %v1828_v36 = vmax.f32 %v1671_v29, 0.0 }
 0x352   : > { %v1829_v35 = vmax.f32 %v1673_v31, 0.0 }
 0x353   : > { %v1830_v8 = vmax.f32 %v1675_v33, 0.0 }
 0x354   : > { %v1891_v37 = vpack.c.bf16 %v1829_v35, %v1827_v34 }
 0x355   : > { %v1892_v38 = vpack.c.bf16 %v1830_v8, %v1828_v36  ;;  %v1678_v10 = vpop.f32.mrb[68].mxu0 }
 0x356   : > { %v1679_v39 = vadd.f32 %v1678_v10, %v3598_v26  ;;  %v1680_v40 = vpop.f32.mrb[69].mxu0 }
 0x357   : > { %v1681_v41 = vadd.f32 %v1680_v40, %v3601_v12  ;;  %v1682_v42 = vpop.f32.mrb[70].mxu0  ;;  %2090 = vmatprep.mubr.bf16.mxu0 %v1892_v38 }
 0x358   : > { %v1683_v43 = vadd.f32 %v1682_v42, %v3598_v26  ;;  %v1684_v44 = vpop.f32.mrb[71].mxu0  ;;  %2091 = vmatmul.mubr.bf16.vlgmr.msra.gmra.mrb[128].mxu0 %v1891_v37  ;;  %v1831_v46 = vmax.f32 %v1679_v39, 0.0 }
 0x359   : > { %v1685_v45 = vadd.f32 %v1684_v44, %v3601_v12  ;;  %v1832_v48 = vmax.f32 %v1681_v41, 0.0 }
 0x35a   : > { %v1833_v47 = vmax.f32 %v1683_v43, 0.0 }
 0x35b   : > { %v1834_v49 = vmax.f32 %v1685_v45, 0.0 }
 0x35c   : > { %v1893_v50 = vpack.c.bf16 %v1833_v47, %v1831_v46 }
 0x35d   : > { %v1894_v51 = vpack.c.bf16 %v1834_v49, %v1832_v48  ;;  %v1688_v52 = vpop.f32.mrb[72].mxu0 }
 0x35e   : > { %v1689_v53 = vadd.f32 %v1688_v52, %v3598_v26  ;;  %v1690_v54 = vpop.f32.mrb[73].mxu0 }
 0x35f   : > { %v1691_v55 = vadd.f32 %v1690_v54, %v3601_v12  ;;  %v1692_v56 = vpop.f32.mrb[74].mxu0  ;;  %2098 = vmatprep.mubr.bf16.mxu0 %v1894_v51 }
 0x360   : > { %v1693_v57 = vadd.f32 %v1692_v56, %v3598_v26  ;;  %v1694_v58 = vpop.f32.mrb[75].mxu0  ;;  %2099 = vmatmul.mubr.bf16.gmra.mrb[132].mxu0 %v1893_v50  ;;  %v1835_v60 = vmax.f32 %v1689_v53, 0.0 }
 0x361   : > { %v1695_v59 = vadd.f32 %v1694_v58, %v3601_v12  ;;  %v1836_v62 = vmax.f32 %v1691_v55, 0.0 }
 0x362   : > { %v1837_v61 = vmax.f32 %v1693_v57, 0.0 }
 0x363   : > { %v1838_v63 = vmax.f32 %v1695_v59, 0.0 }
 0x364   : > { %v1895_v1 = vpack.c.bf16 %v1837_v61, %v1835_v60 }
 0x365   : > { %v1896_v2 = vpack.c.bf16 %v1838_v63, %v1836_v62  ;;  %v1698_v3 = vpop.f32.mrb[76].mxu0 }
 0x366   : > { %v1699_v4 = vadd.f32 %v1698_v3, %v3598_v26  ;;  %v1700_v5 = vpop.f32.mrb[77].mxu0 }
 0x367   : > { %v1701_v6 = vadd.f32 %v1700_v5, %v3601_v12  ;;  %v1702_v7 = vpop.f32.mrb[78].mxu0  ;;  %2106 = vmatprep.mubr.bf16.mxu1 %v1896_v2 }
 0x368   : > { %v1703_v9 = vadd.f32 %v1702_v7, %v3598_v26  ;;  %v1704_v0 = vpop.f32.mrb[79].mxu0  ;;  %2107 = vmatmul.mubr.bf16.vlgmr.msra.gmra.mrb[64].mxu1 %v1895_v1  ;;  %v1839_v14 = vmax.f32 %v1699_v4, 0.0 }
 0x369   : > { %v1705_v11 = vadd.f32 %v1704_v0, %v3601_v12  ;;  %v1840_v16 = vmax.f32 %v1701_v6, 0.0 }
 0x36a   : > { %v1841_v15 = vmax.f32 %v1703_v9, 0.0 }
 0x36b   : > { %v1842_v17 = vmax.f32 %v1705_v11, 0.0 }
 0x36c   : > { %v1897_v18 = vpack.c.bf16 %v1841_v15, %v1839_v14 }
 0x36d   : > { %v1898_v19 = vpack.c.bf16 %v1842_v17, %v1840_v16  ;;  %v1708_v20 = vpop.f32.mrb[80].mxu0 }
 0x36e   : > { %v1709_v21 = vadd.f32 %v1708_v20, %v3598_v26  ;;  %v1710_v22 = vpop.f32.mrb[81].mxu0 }
 0x36f   : > { %v1711_v23 = vadd.f32 %v1710_v22, %v3601_v12  ;;  %v1712_v24 = vpop.f32.mrb[82].mxu0  ;;  %2114 = vmatprep.mubr.bf16.mxu1 %v1898_v19 }
 0x370   : > { %v1713_v25 = vadd.f32 %v1712_v24, %v3598_v26  ;;  %v1714_v27 = vpop.f32.mrb[83].mxu0  ;;  %2115 = vmatmul.mubr.bf16.gmra.mrb[68].mxu1 %v1897_v18  ;;  %v1843_v28 = vmax.f32 %v1709_v21, 0.0 }
 0x371   : > { %v1715_v13 = vadd.f32 %v1714_v27, %v3601_v12  ;;  %v1844_v30 = vmax.f32 %v1711_v23, 0.0 }
 0x372   : > { %v1845_v29 = vmax.f32 %v1713_v25, 0.0 }
 0x373   : > { %v1846_v31 = vmax.f32 %v1715_v13, 0.0 }
 0x374   : > { %v1899_v32 = vpack.c.bf16 %v1845_v29, %v1843_v28 }
 0x375   : > { %v1900_v33 = vpack.c.bf16 %v1846_v31, %v1844_v30  ;;  %v1718_v34 = vpop.f32.mrb[84].mxu0 }
 0x376   : > { %v1719_v35 = vadd.f32 %v1718_v34, %v3598_v26  ;;  %v1720_v36 = vpop.f32.mrb[85].mxu0 }
 0x377   : > { %v1721_v8 = vadd.f32 %v1720_v36, %v3601_v12  ;;  %v1722_v37 = vpop.f32.mrb[86].mxu0  ;;  %2122 = vmatprep.mubr.bf16.mxu1 %v1900_v33 }
 0x378   : > { %v1723_v38 = vadd.f32 %v1722_v37, %v3598_v26  ;;  %v1724_v10 = vpop.f32.mrb[87].mxu0  ;;  %2123 = vmatmul.mubr.bf16.gmra.mrb[72].mxu1 %v1899_v32  ;;  %v1847_v40 = vmax.f32 %v1719_v35, 0.0 }
 0x379   : > { %v1725_v39 = vadd.f32 %v1724_v10, %v3601_v12  ;;  %v1848_v42 = vmax.f32 %v1721_v8, 0.0 }
 0x37a   : > { %v1849_v41 = vmax.f32 %v1723_v38, 0.0 }
 0x37b   : > { %v1850_v43 = vmax.f32 %v1725_v39, 0.0 }
 0x37c   : > { %v1901_v44 = vpack.c.bf16 %v1849_v41, %v1847_v40 }
 0x37d   : > { %v1902_v45 = vpack.c.bf16 %v1850_v43, %v1848_v42  ;;  %v1728_v46 = vpop.f32.mrb[88].mxu0 }
 0x37e   : > { %v1729_v47 = vadd.f32 %v1728_v46, %v3598_v26  ;;  %v1730_v48 = vpop.f32.mrb[89].mxu0 }
 0x37f   : > { %v1731_v49 = vadd.f32 %v1730_v48, %v3601_v12  ;;  %v1732_v50 = vpop.f32.mrb[90].mxu0  ;;  %2130 = vmatprep.mubr.bf16.mxu1 %v1902_v45 }
 0x380   : > { %v1733_v51 = vadd.f32 %v1732_v50, %v3598_v26  ;;  %v1734_v52 = vpop.f32.mrb[91].mxu0  ;;  %2131 = vmatmul.mubr.bf16.gmra.mrb[76].mxu1 %v1901_v44  ;;  %v1851_v54 = vmax.f32 %v1729_v47, 0.0 }
 0x381   : > { %v1735_v53 = vadd.f32 %v1734_v52, %v3601_v12  ;;  %v1852_v56 = vmax.f32 %v1731_v49, 0.0 }
 0x382   : > { %v1853_v55 = vmax.f32 %v1733_v51, 0.0 }
 0x383   : > { %v1854_v57 = vmax.f32 %v1735_v53, 0.0 }
 0x384   : > { %v1903_v58 = vpack.c.bf16 %v1853_v55, %v1851_v54 }
 0x385   : > { %v1904_v59 = vpack.c.bf16 %v1854_v57, %v1852_v56  ;;  %v1738_v60 = vpop.f32.mrb[92].mxu0 }
 0x386   : > { %v1739_v61 = vadd.f32 %v1738_v60, %v3598_v26  ;;  %v1740_v62 = vpop.f32.mrb[93].mxu0 }
 0x387   : > { %v1741_v63 = vadd.f32 %v1740_v62, %v3601_v12  ;;  %v1742_v1 = vpop.f32.mrb[94].mxu0  ;;  %2138 = vmatprep.mubr.bf16.mxu1 %v1904_v59 }
 0x388   : > { %v1743_v2 = vadd.f32 %v1742_v1, %v3598_v26  ;;  %v1744_v3 = vpop.f32.mrb[95].mxu0  ;;  %2139 = vmatmul.mubr.bf16.gmra.mrb[80].mxu1 %v1903_v58  ;;  %v1855_v5 = vmax.f32 %v1739_v61, 0.0 }
 0x389   : > { %v1745_v4 = vadd.f32 %v1744_v3, %v3601_v12  ;;  %v1856_v7 = vmax.f32 %v1741_v63, 0.0 }
 0x38a   : > { %v1857_v6 = vmax.f32 %v1743_v2, 0.0 }
 0x38b   : > { %v1858_v9 = vmax.f32 %v1745_v4, 0.0 }
 0x38c   : > { %v1905_v0 = vpack.c.bf16 %v1857_v6, %v1855_v5 }
 0x38d   : > { %v1906_v11 = vpack.c.bf16 %v1858_v9, %v1856_v7  ;;  %v1748_v14 = vpop.f32.mrb[96].mxu0 }
 0x38e   : > { %v1749_v15 = vadd.f32 %v1748_v14, %v3598_v26  ;;  %v1750_v16 = vpop.f32.mrb[97].mxu0 }
 0x38f   : > { %v1751_v17 = vadd.f32 %v1750_v16, %v3601_v12  ;;  %v1752_v18 = vpop.f32.mrb[98].mxu0  ;;  %2146 = vmatprep.mubr.bf16.mxu1 %v1906_v11 }
 0x390   : > { %v1753_v19 = vadd.f32 %v1752_v18, %v3598_v26  ;;  %v1754_v20 = vpop.f32.mrb[99].mxu0  ;;  %2147 = vmatmul.mubr.bf16.gmra.mrb[84].mxu1 %v1905_v0  ;;  %v1859_v22 = vmax.f32 %v1749_v15, 0.0 }
 0x391   : > { %v1755_v21 = vadd.f32 %v1754_v20, %v3601_v12  ;;  %v1860_v24 = vmax.f32 %v1751_v17, 0.0 }
 0x392   : > { %v1861_v23 = vmax.f32 %v1753_v19, 0.0 }
 0x393   : > { %v1862_v25 = vmax.f32 %v1755_v21, 0.0 }
 0x394   : > { %v1907_v27 = vpack.c.bf16 %v1861_v23, %v1859_v22 }
 0x395   : > { %v1908_v13 = vpack.c.bf16 %v1862_v25, %v1860_v24  ;;  %v1758_v28 = vpop.f32.mrb[100].mxu0 }
 0x396   : > { %v1759_v29 = vadd.f32 %v1758_v28, %v3598_v26  ;;  %v1760_v30 = vpop.f32.mrb[101].mxu0 }
 0x397   : > { %v1761_v31 = vadd.f32 %v1760_v30, %v3601_v12  ;;  %v1762_v32 = vpop.f32.mrb[102].mxu0  ;;  %2154 = vmatprep.mubr.bf16.mxu1 %v1908_v13 }
 0x398   : > { %v1763_v33 = vadd.f32 %v1762_v32, %v3598_v26  ;;  %v1764_v34 = vpop.f32.mrb[103].mxu0  ;;  %2155 = vmatmul.mubr.bf16.gmra.mrb[88].mxu1 %v1907_v27  ;;  %v1863_v36 = vmax.f32 %v1759_v29, 0.0 }
 0x399   : > { %v1765_v35 = vadd.f32 %v1764_v34, %v3601_v12  ;;  %v1864_v37 = vmax.f32 %v1761_v31, 0.0 }
 0x39a   : > { %v1865_v8 = vmax.f32 %v1763_v33, 0.0 }
 0x39b   : > { %v1866_v38 = vmax.f32 %v1765_v35, 0.0 }
 0x39c   : > { %v1909_v10 = vpack.c.bf16 %v1865_v8, %v1863_v36 }
 0x39d   : > { %v1910_v39 = vpack.c.bf16 %v1866_v38, %v1864_v37  ;;  %v1768_v40 = vpop.f32.mrb[104].mxu0 }
 0x39e   : > { %v1769_v41 = vadd.f32 %v1768_v40, %v3598_v26  ;;  %v1770_v42 = vpop.f32.mrb[105].mxu0 }
 0x39f   : > { %v1771_v43 = vadd.f32 %v1770_v42, %v3601_v12  ;;  %v1772_v44 = vpop.f32.mrb[106].mxu0  ;;  %2162 = vmatprep.mubr.bf16.mxu1 %v1910_v39 }
 0x3a0   : > { %v1773_v45 = vadd.f32 %v1772_v44, %v3598_v26  ;;  %v1774_v46 = vpop.f32.mrb[107].mxu0  ;;  %2163 = vmatmul.mubr.bf16.gmra.mrb[92].mxu1 %v1909_v10  ;;  %v1867_v48 = vmax.f32 %v1769_v41, 0.0 }
 0x3a1   : > { %v1775_v47 = vadd.f32 %v1774_v46, %v3601_v12  ;;  %v1868_v50 = vmax.f32 %v1771_v43, 0.0 }
 0x3a2   : > { %v1869_v49 = vmax.f32 %v1773_v45, 0.0 }
 0x3a3   : > { %v1870_v51 = vmax.f32 %v1775_v47, 0.0 }
 0x3a4   : > { %v1911_v52 = vpack.c.bf16 %v1869_v49, %v1867_v48 }
 0x3a5   : > { %v1912_v53 = vpack.c.bf16 %v1870_v51, %v1868_v50  ;;  %v1778_v54 = vpop.f32.mrb[108].mxu0 }
 0x3a6   : > { %v1779_v55 = vadd.f32 %v1778_v54, %v3598_v26  ;;  %v1780_v56 = vpop.f32.mrb[109].mxu0 }
 0x3a7   : > { %v1781_v57 = vadd.f32 %v1780_v56, %v3601_v12  ;;  %v1782_v58 = vpop.f32.mrb[110].mxu0  ;;  %2170 = vmatprep.mubr.bf16.mxu1 %v1912_v53 }
 0x3a8   : > { %v1783_v59 = vadd.f32 %v1782_v58, %v3598_v26  ;;  %v1784_v60 = vpop.f32.mrb[111].mxu0  ;;  %2171 = vmatmul.mubr.bf16.gmra.mrb[96].mxu1 %v1911_v52  ;;  %v1871_v62 = vmax.f32 %v1779_v55, 0.0 }
 0x3a9   : > { %v1785_v61 = vadd.f32 %v1784_v60, %v3601_v12  ;;  %v1872_v1 = vmax.f32 %v1781_v57, 0.0 }
 0x3aa   : > { %v1873_v63 = vmax.f32 %v1783_v59, 0.0 }
 0x3ab   : > { %v1874_v2 = vmax.f32 %v1785_v61, 0.0 }
 0x3ac   : > { %v1913_v3 = vpack.c.bf16 %v1873_v63, %v1871_v62  ;;  %v3671_v63 = vld [vmem:[%s3798_s8] ss:$0 sm:$0xff] }
 0x3ad   : > { %v1914_v4 = vpack.c.bf16 %v1874_v2, %v1872_v1  ;;  %v1788_v5 = vpop.f32.mrb[112].mxu0 }
 0x3ae   : > { %v1789_v6 = vadd.f32 %v1788_v5, %v3598_v26  ;;  %v1790_v7 = vpop.f32.mrb[113].mxu0 }
 0x3af   : > { %v1791_v9 = vadd.f32 %v1790_v7, %v3601_v12  ;;  %v1792_v0 = vpop.f32.mrb[114].mxu0  ;;  %2178 = vmatprep.mubr.bf16.mxu1 %v1914_v4 }
 0x3b0   : > { %v1793_v11 = vadd.f32 %v1792_v0, %v3598_v26  ;;  %v1794_v14 = vpop.f32.mrb[115].mxu0  ;;  %2179 = vmatmul.mubr.bf16.gmra.mrb[100].mxu1 %v1913_v3  ;;  %v1875_v16 = vmax.f32 %v1789_v6, 0.0 }
 0x3b1   : > { %v1795_v15 = vadd.f32 %v1794_v14, %v3601_v12  ;;  %v1876_v18 = vmax.f32 %v1791_v9, 0.0 }
 0x3b2   : > { %v1877_v17 = vmax.f32 %v1793_v11, 0.0 }
 0x3b3   : > { %v1878_v19 = vmax.f32 %v1795_v15, 0.0 }
 0x3b4   : > { %v1915_v20 = vpack.c.bf16 %v1877_v17, %v1875_v16 }
 0x3b5   : > { %v1916_v21 = vpack.c.bf16 %v1878_v19, %v1876_v18  ;;  %v1798_v22 = vpop.f32.mrb[116].mxu0 }
 0x3b6   : > { %v1799_v23 = vadd.f32 %v1798_v22, %v3598_v26  ;;  %v1800_v24 = vpop.f32.mrb[117].mxu0 }
 0x3b7   : > { %v1801_v25 = vadd.f32 %v1800_v24, %v3601_v12  ;;  %v1802_v27 = vpop.f32.mrb[118].mxu0  ;;  %2186 = vmatprep.mubr.bf16.mxu1 %v1916_v21 }
 0x3b8   : > { %v1803_v13 = vadd.f32 %v1802_v27, %v3598_v26  ;;  %v1804_v28 = vpop.f32.mrb[119].mxu0  ;;  %2187 = vmatmul.mubr.bf16.gmra.mrb[104].mxu1 %v1915_v20  ;;  %v1879_v30 = vmax.f32 %v1799_v23, 0.0 }
 0x3b9   : > { %v1805_v29 = vadd.f32 %v1804_v28, %v3601_v12  ;;  %v1880_v32 = vmax.f32 %v1801_v25, 0.0 }
 0x3ba   : > { %v1881_v31 = vmax.f32 %v1803_v13, 0.0 }
 0x3bb   : > { %v1882_v33 = vmax.f32 %v1805_v29, 0.0 }
 0x3bc   : > { %v1917_v34 = vpack.c.bf16 %v1881_v31, %v1879_v30 }
 0x3bd   : > { %v1918_v35 = vpack.c.bf16 %v1882_v33, %v1880_v32  ;;  %v1808_v36 = vpop.f32.mrb[120].mxu0 }
 0x3be   : > { %v1809_v8 = vadd.f32 %v1808_v36, %v3598_v26  ;;  %v1810_v37 = vpop.f32.mrb[121].mxu0 }
 0x3bf   : > { %v1811_v38 = vadd.f32 %v1810_v37, %v3601_v12  ;;  %v1812_v10 = vpop.f32.mrb[122].mxu0  ;;  %2194 = vmatprep.mubr.bf16.mxu1 %v1918_v35 }
 0x3c0   : > { %v1813_v39 = vadd.f32 %v1812_v10, %v3598_v26  ;;  %v1814_v40 = vpop.f32.mrb[123].mxu0  ;;  %2195 = vmatmul.mubr.bf16.gmra.mrb[108].mxu1 %v1917_v34  ;;  %v1883_v42 = vmax.f32 %v1809_v8, 0.0 }
 0x3c1   : > { %v1815_v41 = vadd.f32 %v1814_v40, %v3601_v12  ;;  %v1884_v44 = vmax.f32 %v1811_v38, 0.0 }
 0x3c2   : > { %v1885_v43 = vmax.f32 %v1813_v39, 0.0 }
 0x3c3   : > { %v1886_v45 = vmax.f32 %v1815_v41, 0.0 }
 0x3c4   : > { %v1919_v46 = vpack.c.bf16 %v1885_v43, %v1883_v42 }
 0x3c5   : > { %v1920_v47 = vpack.c.bf16 %v1886_v45, %v1884_v44  ;;  %v1818_v48 = vpop.f32.mrb[124].mxu0 }
 0x3c6   : > { %v1819_v49 = vadd.f32 %v1818_v48, %v3598_v26  ;;  %v1820_v50 = vpop.f32.mrb[125].mxu0 }
 0x3c7   : > { %v1821_v51 = vadd.f32 %v1820_v50, %v3601_v12  ;;  %v1822_v52 = vpop.f32.mrb[126].mxu0  ;;  %2202 = vmatprep.mubr.bf16.mxu1 %v1920_v47 }
 0x3c8   : > { %v1823_v53 = vadd.f32 %v1822_v52, %v3598_v26  ;;  %v1824_v54 = vpop.f32.mrb[127].mxu0  ;;  %2203 = vmatmul.mubr.bf16.gmra.mrb[112].mxu1 %v1919_v46  ;;  %v1887_v56 = vmax.f32 %v1819_v49, 0.0 }
 0x3c9   : > { %v1825_v55 = vadd.f32 %v1824_v54, %v3601_v12  ;;  %v1888_v58 = vmax.f32 %v1821_v51, 0.0 }
 0x3ca   : > { %v1889_v57 = vmax.f32 %v1823_v53, 0.0 }
 0x3cb   : > { %v1890_v59 = vmax.f32 %v1825_v55, 0.0 }
 0x3cc   : > { %v1921_v60 = vpack.c.bf16 %v1889_v57, %v1887_v56 }
 0x3cd   : > { %v1922_v61 = vpack.c.bf16 %v1890_v59, %v1888_v58 }
 0x3cf   : > { %2210 = vmatprep.mubr.bf16.mxu1 %v1922_v61 }
 0x3d0   : > { %2211 = vmatmul.mubr.bf16.gmra.mrb[116].mxu1 %v1921_v60 }
 0x42b   : > { %v2529_v62 = vpop.f32.mrb[128].mxu0 }
 0x42c   : > { %v2530_v26 = vpop.f32.mrb[129].mxu0 }
 0x42d   : > { %v2531_v1 = vadd.f32 %v2530_v26, %v2529_v62  ;;  %v2532_v2 = vpop.f32.mrb[130].mxu0 }
 0x42e   : > { %v2533_v3 = vpop.f32.mrb[131].mxu0 }
 0x42f   : > { %v2093_v12 = vadd.f32 %v2531_v1, %v3671_v63  ;;  %v2534_v4 = vadd.f32 %v2533_v3, %v2532_v2 }
 0x431   : > { %2219 = vst [vmem:[%s3674_s16] sm:$0xff] %v2093_v12  ;;  %v2096_v5 = vadd.f32 %v2534_v4, %v3671_v63 }
 0x433   : > { %2220 = vst [vmem:[%s3674_s16 + $0x8] sm:$0xff] %v2096_v5  ;;  %v2535_v6 = vpop.f32.mrb[132].mxu0 }
 0x434   : > { %v2536_v7 = vpop.f32.mrb[133].mxu0 }
 0x435   : > { %v2537_v9 = vadd.f32 %v2536_v7, %v2535_v6  ;;  %v2538_v0 = vpop.f32.mrb[134].mxu0 }
 0x436   : > { %v2539_v11 = vpop.f32.mrb[135].mxu0 }
 0x437   : > { %v2101_v14 = vadd.f32 %v2537_v9, %v3671_v63  ;;  %v2540_v15 = vadd.f32 %v2539_v11, %v2538_v0 }
 0x439   : > { %2221 = vst [vmem:[%s3674_s16 + $0x10] sm:$0xff] %v2101_v14  ;;  %v2104_v16 = vadd.f32 %v2540_v15, %v3671_v63 }
 0x43b   : > { %2222 = vst [vmem:[%s3674_s16 + $0x18] sm:$0xff] %v2104_v16  ;;  %v2541_v17 = vpop.f32.mrb[64].mxu1 }
 0x43c   : > { %v2542_v18 = vpop.f32.mrb[65].mxu1 }
 0x43d   : > { %v2543_v19 = vadd.f32 %v2542_v18, %v2541_v17  ;;  %v2544_v20 = vpop.f32.mrb[66].mxu1 }
 0x43e   : > { %v2545_v21 = vpop.f32.mrb[67].mxu1 }
 0x43f   : > { %v2109_v22 = vadd.f32 %v2543_v19, %v3671_v63  ;;  %v2546_v23 = vadd.f32 %v2545_v21, %v2544_v20 }
 0x441   : > { %2223 = vst [vmem:[%s3674_s16 + $0x20] sm:$0xff] %v2109_v22  ;;  %v2112_v24 = vadd.f32 %v2546_v23, %v3671_v63 }
 0x443   : > { %2224 = vst [vmem:[%s3674_s16 + $0x28] sm:$0xff] %v2112_v24  ;;  %v2547_v25 = vpop.f32.mrb[68].mxu1 }
 0x444   : > { %v2548_v27 = vpop.f32.mrb[69].mxu1 }
 0x445   : > { %v2549_v13 = vadd.f32 %v2548_v27, %v2547_v25  ;;  %v2550_v28 = vpop.f32.mrb[70].mxu1 }
 0x446   : > { %v2551_v29 = vpop.f32.mrb[71].mxu1 }
 0x447   : > { %v2117_v30 = vadd.f32 %v2549_v13, %v3671_v63  ;;  %v2552_v31 = vadd.f32 %v2551_v29, %v2550_v28 }
 0x449   : > { %2225 = vst [vmem:[%s3674_s16 + $0x30] sm:$0xff] %v2117_v30  ;;  %v2120_v32 = vadd.f32 %v2552_v31, %v3671_v63 }
 0x44b   : > { %2226 = vst [vmem:[%s3674_s16 + $0x38] sm:$0xff] %v2120_v32  ;;  %v2553_v33 = vpop.f32.mrb[72].mxu1 }
 0x44c   : > { %v2554_v34 = vpop.f32.mrb[73].mxu1 }
 0x44d   : > { %v2555_v35 = vadd.f32 %v2554_v34, %v2553_v33  ;;  %v2556_v36 = vpop.f32.mrb[74].mxu1 }
 0x44e   : > { %v2557_v8 = vpop.f32.mrb[75].mxu1 }
 0x44f   : > { %v2125_v37 = vadd.f32 %v2555_v35, %v3671_v63  ;;  %v2558_v38 = vadd.f32 %v2557_v8, %v2556_v36 }
 0x451   : > { %2227 = vst [vmem:[%s3674_s16 + $0x40] sm:$0xff] %v2125_v37  ;;  %v2128_v10 = vadd.f32 %v2558_v38, %v3671_v63 }
 0x453   : > { %2228 = vst [vmem:[%s3674_s16 + $0x48] sm:$0xff] %v2128_v10  ;;  %v2559_v39 = vpop.f32.mrb[76].mxu1 }
 0x454   : > { %v2560_v40 = vpop.f32.mrb[77].mxu1 }
 0x455   : > { %v2561_v41 = vadd.f32 %v2560_v40, %v2559_v39  ;;  %v2562_v42 = vpop.f32.mrb[78].mxu1 }
 0x456   : > { %v2563_v43 = vpop.f32.mrb[79].mxu1 }
 0x457   : > { %v2133_v44 = vadd.f32 %v2561_v41, %v3671_v63  ;;  %v2564_v45 = vadd.f32 %v2563_v43, %v2562_v42 }
 0x459   : > { %2229 = vst [vmem:[%s3674_s16 + $0x50] sm:$0xff] %v2133_v44  ;;  %v2136_v46 = vadd.f32 %v2564_v45, %v3671_v63 }
 0x45b   : > { %2230 = vst [vmem:[%s3674_s16 + $0x58] sm:$0xff] %v2136_v46  ;;  %v2565_v47 = vpop.f32.mrb[80].mxu1 }
 0x45c   : > { %v2566_v48 = vpop.f32.mrb[81].mxu1 }
 0x45d   : > { %v2567_v49 = vadd.f32 %v2566_v48, %v2565_v47  ;;  %v2568_v50 = vpop.f32.mrb[82].mxu1 }
 0x45e   : > { %v2569_v51 = vpop.f32.mrb[83].mxu1 }
 0x45f   : > { %v2141_v52 = vadd.f32 %v2567_v49, %v3671_v63  ;;  %v2570_v53 = vadd.f32 %v2569_v51, %v2568_v50 }
 0x461   : > { %2231 = vst [vmem:[%s3674_s16 + $0x60] sm:$0xff] %v2141_v52  ;;  %v2144_v54 = vadd.f32 %v2570_v53, %v3671_v63 }
 0x463   : > { %2232 = vst [vmem:[%s3674_s16 + $0x68] sm:$0xff] %v2144_v54  ;;  %v2571_v55 = vpop.f32.mrb[84].mxu1 }
 0x464   : > { %v2572_v56 = vpop.f32.mrb[85].mxu1 }
 0x465   : > { %v2573_v57 = vadd.f32 %v2572_v56, %v2571_v55  ;;  %v2574_v58 = vpop.f32.mrb[86].mxu1 }
 0x466   : > { %v2575_v59 = vpop.f32.mrb[87].mxu1 }
 0x467   : > { %v2149_v60 = vadd.f32 %v2573_v57, %v3671_v63  ;;  %v2576_v61 = vadd.f32 %v2575_v59, %v2574_v58 }
 0x469   : > { %2233 = vst [vmem:[%s3674_s16 + $0x70] sm:$0xff] %v2149_v60  ;;  %v2152_v62 = vadd.f32 %v2576_v61, %v3671_v63 }
 0x46b   : > { %2234 = vst [vmem:[%s3674_s16 + $0x78] sm:$0xff] %v2152_v62  ;;  %v2577_v26 = vpop.f32.mrb[88].mxu1 }
 0x46c   : > { %v2578_v1 = vpop.f32.mrb[89].mxu1 }
 0x46d   : > { %v2579_v2 = vadd.f32 %v2578_v1, %v2577_v26  ;;  %v2580_v3 = vpop.f32.mrb[90].mxu1 }
 0x46e   : > { %v2581_v12 = vpop.f32.mrb[91].mxu1 }
 0x46f   : > { %v2157_v4 = vadd.f32 %v2579_v2, %v3671_v63  ;;  %v2582_v5 = vadd.f32 %v2581_v12, %v2580_v3 }
 0x471   : > { %2235 = vst [vmem:[%s3674_s16 + $0x80] sm:$0xff] %v2157_v4  ;;  %v2160_v6 = vadd.f32 %v2582_v5, %v3671_v63 }
 0x473   : > { %2236 = vst [vmem:[%s3674_s16 + $0x88] sm:$0xff] %v2160_v6  ;;  %v2583_v7 = vpop.f32.mrb[92].mxu1 }
 0x474   : > { %v2584_v9 = vpop.f32.mrb[93].mxu1 }
 0x475   : > { %v2585_v0 = vadd.f32 %v2584_v9, %v2583_v7  ;;  %v2586_v11 = vpop.f32.mrb[94].mxu1 }
 0x476   : > { %v2587_v14 = vpop.f32.mrb[95].mxu1 }
 0x477   : > { %v2165_v15 = vadd.f32 %v2585_v0, %v3671_v63  ;;  %v2588_v16 = vadd.f32 %v2587_v14, %v2586_v11 }
 0x479   : > { %2237 = vst [vmem:[%s3674_s16 + $0x90] sm:$0xff] %v2165_v15  ;;  %v2168_v17 = vadd.f32 %v2588_v16, %v3671_v63 }
 0x47b   : > { %2238 = vst [vmem:[%s3674_s16 + $0x98] sm:$0xff] %v2168_v17  ;;  %v2589_v18 = vpop.f32.mrb[96].mxu1 }
 0x47c   : > { %v2590_v19 = vpop.f32.mrb[97].mxu1 }
 0x47d   : > { %v2591_v20 = vadd.f32 %v2590_v19, %v2589_v18  ;;  %v2592_v21 = vpop.f32.mrb[98].mxu1 }
 0x47e   : > { %v2593_v22 = vpop.f32.mrb[99].mxu1 }
 0x47f   : > { %v2173_v23 = vadd.f32 %v2591_v20, %v3671_v63  ;;  %v2594_v24 = vadd.f32 %v2593_v22, %v2592_v21 }
 0x481   : > { %2239 = vst [vmem:[%s3674_s16 + $0xa0] sm:$0xff] %v2173_v23  ;;  %v2176_v25 = vadd.f32 %v2594_v24, %v3671_v63 }
 0x483   : > { %2240 = vst [vmem:[%s3674_s16 + $0xa8] sm:$0xff] %v2176_v25  ;;  %v2595_v27 = vpop.f32.mrb[100].mxu1 }
 0x484   : > { %v2596_v13 = vpop.f32.mrb[101].mxu1 }
 0x485   : > { %v2597_v28 = vadd.f32 %v2596_v13, %v2595_v27  ;;  %v2598_v29 = vpop.f32.mrb[102].mxu1 }
 0x486   : > { %v2599_v30 = vpop.f32.mrb[103].mxu1 }
 0x487   : > { %v2181_v31 = vadd.f32 %v2597_v28, %v3671_v63  ;;  %v2600_v32 = vadd.f32 %v2599_v30, %v2598_v29 }
 0x489   : > { %2241 = vst [vmem:[%s3674_s16 + $0xb0] sm:$0xff] %v2181_v31  ;;  %v2184_v33 = vadd.f32 %v2600_v32, %v3671_v63 }
 0x48b   : > { %2242 = vst [vmem:[%s3674_s16 + $0xb8] sm:$0xff] %v2184_v33  ;;  %v2601_v34 = vpop.f32.mrb[104].mxu1 }
 0x48c   : > { %v2602_v35 = vpop.f32.mrb[105].mxu1 }
 0x48d   : > { %v2603_v36 = vadd.f32 %v2602_v35, %v2601_v34  ;;  %v2604_v8 = vpop.f32.mrb[106].mxu1 }
 0x48e   : > { %v2605_v37 = vpop.f32.mrb[107].mxu1 }
 0x48f   : > { %v2189_v38 = vadd.f32 %v2603_v36, %v3671_v63  ;;  %v2606_v10 = vadd.f32 %v2605_v37, %v2604_v8 }
 0x491   : > { %2243 = vst [vmem:[%s3674_s16 + $0xc0] sm:$0xff] %v2189_v38  ;;  %v2192_v39 = vadd.f32 %v2606_v10, %v3671_v63 }
 0x493   : > { %2244 = vst [vmem:[%s3674_s16 + $0xc8] sm:$0xff] %v2192_v39  ;;  %v2607_v40 = vpop.f32.mrb[108].mxu1 }
 0x494   : > { %v2608_v41 = vpop.f32.mrb[109].mxu1 }
 0x495   : > { %v2609_v42 = vadd.f32 %v2608_v41, %v2607_v40  ;;  %v2610_v43 = vpop.f32.mrb[110].mxu1 }
 0x496   : > { %v2611_v44 = vpop.f32.mrb[111].mxu1 }
 0x497   : > { %v2197_v45 = vadd.f32 %v2609_v42, %v3671_v63  ;;  %v2612_v46 = vadd.f32 %v2611_v44, %v2610_v43 }
 0x499   : > { %2245 = vst [vmem:[%s3674_s16 + $0xd0] sm:$0xff] %v2197_v45  ;;  %v2200_v47 = vadd.f32 %v2612_v46, %v3671_v63 }
 0x49b   : > { %2246 = vst [vmem:[%s3674_s16 + $0xd8] sm:$0xff] %v2200_v47  ;;  %v2613_v48 = vpop.f32.mrb[112].mxu1 }
 0x49c   : > { %v2614_v49 = vpop.f32.mrb[113].mxu1 }
 0x49d   : > { %v2615_v50 = vadd.f32 %v2614_v49, %v2613_v48  ;;  %v2616_v51 = vpop.f32.mrb[114].mxu1 }
 0x49e   : > { %v2617_v52 = vpop.f32.mrb[115].mxu1 }
 0x49f   : > { %v2205_v53 = vadd.f32 %v2615_v50, %v3671_v63  ;;  %v2618_v54 = vadd.f32 %v2617_v52, %v2616_v51 }
 0x4a1   : > { %2247 = vst [vmem:[%s3674_s16 + $0xe0] sm:$0xff] %v2205_v53  ;;  %v2208_v55 = vadd.f32 %v2618_v54, %v3671_v63 }
 0x4a3   : > { %2248 = vst [vmem:[%s3674_s16 + $0xe8] sm:$0xff] %v2208_v55  ;;  %v2619_v56 = vpop.f32.mrb[116].mxu1 }
 0x4a4   : > { %v2620_v57 = vpop.f32.mrb[117].mxu1 }
 0x4a5   : > { %v2621_v58 = vadd.f32 %v2620_v57, %v2619_v56  ;;  %v2622_v59 = vpop.f32.mrb[118].mxu1 }
 0x4a6   : > { %v2623_v60 = vpop.f32.mrb[119].mxu1 }
 0x4a7   : > { %v2213_v61 = vadd.f32 %v2621_v58, %v3671_v63  ;;  %v2624_v62 = vadd.f32 %v2623_v60, %v2622_v59 }
 0x4a9   : > { %2249 = vst [vmem:[%s3674_s16 + $0xf0] sm:$0xff] %v2213_v61  ;;  %v2216_v26 = vadd.f32 %v2624_v62, %v3671_v63 }
 0x4ab   : > { %2250 = vst [vmem:[%s3674_s16 + $0xf8] sm:$0xff] %v2216_v26 }
 0x4ac   : > { %3042 = shalt.err (!%p3039_p13)
}
 0x4ad   : > { %s3043_s22 = scalar_lea.hbm %s3741_s17, 4096  ;;  %s3047_s16 = scalar_lea.hbm %s3823_s15, 8192 }
 0x4ae   : > { %p3044_p9 = scmp.ne.s32.totalorder %s3741_s17, %s3043_s22  ;;  %p3048_p4 = scmp.lt.u32.totalorder %s3741_s17, %s3823_s15 }
 0x4af   : > { %p3049_p8 = scmp.lt.u32.totalorder %s3047_s16, %s3043_s22  ;;  %p3051_p10 = scmp.lt.u32.totalorder %s3043_s22, %s3741_s17 }
 0x4b0   : > { %p3045_p0 = pnand %p3044_p9, %p3342_p3 }
 0x4b1   : > { %p3050_p6 = por %p3049_p8, %p3048_p4 }
 0x4b2   : > { %p3046_p11 = pneg %p3045_p0 }
 0x4b3   : > { %p3052_p5 = por %p3051_p10, %p3050_p6 }
 0x4b5   : > { %p3053_p7 = pnand %p3052_p5, %p3046_p11 }
 0x4b7   : > { %3056 = shalt.err (!%p3053_p7)
}
 0x4b8   : > { %s3116_s29 = smov 128   ;;  %s3117_s25 = smov 8  }
 0x4b9   : > { %2659 = dma.vmem_to_hbm [thread:$0]  (%p3342_p3), %s3743_s21, 4096, %s3741_s17, %s2252_s13, %s3116_s29, %s3116_s29, %s3117_s25  }
 0x4ba PF: > { %s3824_s14 = sld [smem:[#allocation16_spill]]  ;;  %s3825_s19 = sld [smem:[#allocation17_spill]] }
 0x4bb   : > { %p3827_p1 = scmp.ge.s32.totalorder %s3103_s12, 2 }
 0x4c0   : > { %s2280_s26 = sand.u32 1, %s3824_s14   ;;  %p3826_p12 = scmp.ne.s32.totalorder %s3825_s19, 0 }
 0x4c1   : > { %s2281_s22 = scalar_lea.sflag [#allocation4], %s2280_s26 }
 0x4c2   : > { %p2679_p2 = pnand %p3827_p1, %p3826_p12 }
 0x4c4   : > { %3086 = dma.done.wait (!%p2679_p2), %s2281_s22, 4096  }
 0x4c5   : > { %3088 = vsyncadd (!%p2679_p2), %s2281_s22, 4294963200  ;;  %p24_p13 = scmp.ge.s32.totalorder %s3329_s9, 4   ;;  %s3828_s30 = smov %s3095_s10 }
 0x4c6   : > { %s3829_s10 = smov %s3099_s11  ;;  %s3830_s11 = smov %s3338_s28 }
 0x4c7   : > { %s3831_s12 = smov %s3329_s9  ;;  %26 = sbr.rel (!%p24_p13) target bundleno = 9 (0x9), region = 117 }
 0x4ce   :  { %2286 = vsyncpa [#allocation3], 1 }
 0x4cf   :  { %2288 = vsyncpa [#allocation3 + $0x1], 1 }
 0x4d0   :  { %2289 = vsyncpa [#allocation6], 1 }
 0x4d1   :  { %2290 = vsyncpa [#allocation9], 1 }
 0x4d2   :  { %2291 = vsyncpa [#allocation4], 1 }
 0x4d3   :  { %2293 = vsyncpa [#allocation4 + $0x1], 1 }

</bundles_post_ra>
